<compile_context>
chip_gen: v6e
topology: v6e:2x2x1
jax: 0.10.0
libtpu: 0.0.40
codegen_flags: <defaults>
</compile_context>

<pallas_src>
import functools

import jax
import jax.numpy as jnp
from jax.experimental import pallas as pl
from jax.experimental.pallas import tpu as pltpu


def _l2norm(y):
    # F.normalize(p=2, dim=1): y / max(||y||, 1e-12) -> y * rsqrt(max(ss, 1e-24))
    ss = jnp.sum(y * y, axis=1, keepdims=True)
    return y * jax.lax.rsqrt(jnp.maximum(ss, 1e-24))


def _branch_kernel(xm_ref, xj_ref, ewm_ref, ewj_ref, eb_ref,
                   hw_ref, hb_ref, f1w_ref, f1b_ref,
                   sel_ref, f2w_ref, f2b_ref,
                   feat_ref, featjig_ref):
    """One modality branch (encoder_i + head_i + head_i_jig), picked by grid axis 0."""
    k = sel_ref.shape[1]

    # ---- main batch: (mean-pool folded into weights) encoder -> ReLU -> head ----
    feat_m = jnp.dot(xm_ref[0], ewm_ref[0], preferred_element_type=jnp.float32)
    feat_m = jnp.maximum(feat_m + eb_ref[0], 0.0)                     # [N, D] f32
    y = jnp.dot(feat_m.astype(jnp.bfloat16), hw_ref[0],
                preferred_element_type=jnp.float32) + hb_ref[0]       # [N, F] f32
    feat_ref[...] = _l2norm(y)

    # ---- jigsaw batch: encoder -> ReLU -> fc1 -> shuffle -> fc2 -> L2norm ----
    feat_j = jnp.dot(xj_ref[0], ewj_ref[0], preferred_element_type=jnp.float32)
    feat_j = jnp.maximum(feat_j + eb_ref[0], 0.0)                     # [Nj, D] f32
    h = jnp.dot(feat_j.astype(jnp.bfloat16), f1w_ref[0],
                preferred_element_type=jnp.float32) + f1b_ref[0]      # [Nj, F] f32
    h = h.astype(jnp.bfloat16)

    n_img, fdim = featjig_ref.shape
    acc = jnp.zeros((n_img, fdim), jnp.float32)
    for j in range(k):  # static unroll: shuffle+view+fc2 as k selection matmuls
        # sel[j][i, r] == 1  iff  shuffled row i*k + j is h[r]  (exact 0/1 gather)
        hj = jnp.dot(sel_ref[0, j], h, preferred_element_type=jnp.float32)
        acc = acc + jnp.dot(hj.astype(jnp.bfloat16), f2w_ref[0, j],
                            preferred_element_type=jnp.float32)
    featjig_ref[...] = _l2norm(acc + f2b_ref[0])


def cmc_multiheads_forward(params, x, x_jig, *, in_channel_list=(1, 2), k=9,
                           shuffle_key=None):
    c1, c2 = in_channel_list
    cmax = max(c1, c2)
    N, _, Hm, Wm = x.shape
    Nj, _, Hj, Wj = x_jig.shape
    HWm, HWj = Hm * Wm, Hj * Wj
    n_img = Nj // k
    D = params["enc1_w"].shape[1]
    F = params["head1_w"].shape[1]

    def pad_ch(a, c):  # zero-pad channels to cmax (exact: padded weights are zero)
        if c == cmax:
            return a
        pad = jnp.zeros(a.shape[:1] + (cmax - c,) + a.shape[2:], a.dtype)
        return jnp.concatenate([a, pad], axis=1)

    def pad_w(w, c):
        if c == cmax:
            return w
        return jnp.concatenate([w, jnp.zeros((cmax - c, w.shape[1]), w.dtype)], 0)

    # inputs: [modality, rows, cmax*H*W], bf16 for the MXU
    xm = jnp.stack([pad_ch(x[:, :c1], c1), pad_ch(x[:, c1:c1 + c2], c2)], 0)
    xm = xm.reshape(2, N, cmax * HWm).astype(jnp.bfloat16)
    xj = jnp.stack([pad_ch(x_jig[:, :c1], c1), pad_ch(x_jig[:, c1:c1 + c2], c2)], 0)
    xj = xj.reshape(2, Nj, cmax * HWj).astype(jnp.bfloat16)

    # encoder weights: channel-padded, with the 1/(H*W) mean-pool folded in
    ew = jnp.stack([pad_w(params["enc1_w"], c1), pad_w(params["enc2_w"], c2)], 0)
    ew_m = (jnp.repeat(ew, HWm, axis=1) / HWm).astype(jnp.bfloat16)   # [2, cmax*HWm, D]
    ew_j = (jnp.repeat(ew, HWj, axis=1) / HWj).astype(jnp.bfloat16)   # [2, cmax*HWj, D]
    eb = jnp.stack([params["enc1_b"], params["enc2_b"]], 0)           # [2, 1, D]

    hw = jnp.stack([params["head1_w"], params["head2_w"]], 0).astype(jnp.bfloat16)
    hb = jnp.stack([params["head1_b"], params["head2_b"]], 0)
    jg1, jg2 = params["head1_jig"], params["head2_jig"]
    f1w = jnp.stack([jg1["fc1_w"], jg2["fc1_w"]], 0).astype(jnp.bfloat16)
    f1b = jnp.stack([jg1["fc1_b"], jg2["fc1_b"]], 0)
    f2w = jnp.stack([jg1["fc2_w"], jg2["fc2_w"]], 0).reshape(2, k, F, F)
    f2w = f2w.astype(jnp.bfloat16)
    f2b = jnp.stack([jg1["fc2_b"], jg2["fc2_b"]], 0)

    # per-modality jigsaw shuffle as 0/1 selection matrices [k, n_img, Nj]
    # TODO(synk): deterministic stand-in for torch.randperm-based shuffle.
    def build_sel(key):
        perms = []
        for i in range(n_img):
            key, sub = jax.random.split(key)
            perms.append(jax.random.permutation(sub, k) + i * k)
        ids = jnp.concatenate(perms)                                  # [Nj]
        onehot = jax.nn.one_hot(ids, Nj, dtype=jnp.bfloat16)          # [Nj, Nj]
        return onehot.reshape(n_img, k, Nj).transpose(1, 0, 2)        # [k, n_img, Nj]

    key1, key2 = jax.random.split(shuffle_key)
    sel = jnp.stack([build_sel(key1), build_sel(key2)], 0)            # [2, k, n_img, Nj]

    feat, feat_jig = pl.pallas_call(
        _branch_kernel,
        grid=(2,),
        in_specs=[
            pl.BlockSpec((1, N, cmax * HWm), lambda m: (m, 0, 0)),
            pl.BlockSpec((1, Nj, cmax * HWj), lambda m: (m, 0, 0)),
            pl.BlockSpec((1, cmax * HWm, D), lambda m: (m, 0, 0)),
            pl.BlockSpec((1, cmax * HWj, D), lambda m: (m, 0, 0)),
            pl.BlockSpec((1, 1, D), lambda m: (m, 0, 0)),
            pl.BlockSpec((1, D, F), lambda m: (m, 0, 0)),
            pl.BlockSpec((1, 1, F), lambda m: (m, 0, 0)),
            pl.BlockSpec((1, D, F), lambda m: (m, 0, 0)),
            pl.BlockSpec((1, 1, F), lambda m: (m, 0, 0)),
            pl.BlockSpec((1, k, n_img, Nj), lambda m: (m, 0, 0, 0)),
            pl.BlockSpec((1, k, F, F), lambda m: (m, 0, 0, 0)),
            pl.BlockSpec((1, 1, F), lambda m: (m, 0, 0)),
        ],
        out_specs=(
            pl.BlockSpec((N, F), lambda m: (0, m)),        # lane-dense [N, 2F] slab
            pl.BlockSpec((n_img, F), lambda m: (0, m)),    # lane-dense [n_img, 2F] slab
        ),
        out_shape=(
            jax.ShapeDtypeStruct((N, 2 * F), jnp.float32),
            jax.ShapeDtypeStruct((n_img, 2 * F), jnp.float32),
        ),
        compiler_params=pltpu.CompilerParams(
            dimension_semantics=("parallel",)),
    )(xm, xj, ew_m, ew_j, eb, hw, hb, f1w, f1b, sel, f2w, f2b)
    return feat, feat_jig


# ----------------------------------------------------------------------------
# Deterministic parameter init (weights stored [in, out], i.e. PyTorch W^T)
# ----------------------------------------------------------------------------
def init_params(key, *, in_channel_list=(1, 2), dim_in=256, feat_dim=128, k=9):
    c1, c2 = in_channel_list
    keys = jax.random.split(key, 16)

    def lin(kk, din, dout):
        w = jax.random.normal(kk, (din, dout), jnp.float32) * (1.0 / jnp.sqrt(din))
        b = jnp.zeros((1, dout), jnp.float32)
        return w, b

    p = {}
    p["enc1_w"], p["enc1_b"] = lin(keys[0], c1, dim_in)
    p["enc2_w"], p["enc2_b"] = lin(keys[1], c2, dim_in)
    p["head1_w"], p["head1_b"] = lin(keys[2], dim_in, feat_dim)
    p["head2_w"], p["head2_b"] = lin(keys[3], dim_in, feat_dim)
    for name, kk1, kk2 in (("head1_jig", keys[4], keys[5]),
                           ("head2_jig", keys[6], keys[7])):
        fc1_w, fc1_b = lin(kk1, dim_in, feat_dim)
        fc2_w, fc2_b = lin(kk2, feat_dim * k, feat_dim)
        p[name] = {"fc1_w": fc1_w, "fc1_b": fc1_b, "fc2_w": fc2_w, "fc2_b": fc2_b}
    return p


if __name__ == "__main__":
    key = jax.random.PRNGKey(0)
    k_param, k_x, k_xjig, k_shuffle = jax.random.split(key, 4)

    in_channel_list = (1, 2)
    k_jig = 9
    N = 2                               # images
    dim_in = 256                        # scaled-down stand-in for 2048 * width
    feat_dim = 128

    params = init_params(k_param, in_channel_list=in_channel_list,
                         dim_in=dim_in, feat_dim=feat_dim, k=k_jig)

    # NCHW inputs (channels = 1 + 2 = 3), jigsaw batch = N * k patches.
    x = jax.random.normal(k_x, (N, sum(in_channel_list), 16, 16), jnp.float32)
    x_jig = jax.random.normal(k_xjig, (N * k_jig, sum(in_channel_list), 8, 8),
                              jnp.float32)

    fwd = jax.jit(functools.partial(cmc_multiheads_forward,
                                    in_channel_list=in_channel_list, k=k_jig))
    feat, feat_jig = fwd(params, x, x_jig, shuffle_key=k_shuffle)
    feat = jax.block_until_ready(feat)
    feat_jig = jax.block_until_ready(feat_jig)

    assert feat.shape == (N, 2 * feat_dim)
    assert feat_jig.shape == (N, 2 * feat_dim)
    # every head ends in an f32 L2-normalize -> each half has unit norm
    assert jnp.allclose(jnp.linalg.norm(feat[:, :feat_dim], axis=1), 1.0, atol=2e-3)
    assert jnp.allclose(jnp.linalg.norm(feat[:, feat_dim:], axis=1), 1.0, atol=2e-3)
    assert jnp.allclose(jnp.linalg.norm(feat_jig[:, :feat_dim], axis=1), 1.0, atol=2e-3)
    assert jnp.allclose(jnp.linalg.norm(feat_jig[:, feat_dim:], axis=1), 1.0, atol=2e-3)

    print("KERNEL_OK")
</pallas_src>

<mosaic_0001>
module attributes {stable_mosaic.version = 11 : i64} {
  func.func @_branch_kernel(%arg0: i32, %arg1: memref<1x2x512xbf16, #tpu.memory_space<vmem>>, %arg2: memref<1x18x128xbf16, #tpu.memory_space<vmem>>, %arg3: memref<1x512x256xbf16, #tpu.memory_space<vmem>>, %arg4: memref<1x128x256xbf16, #tpu.memory_space<vmem>>, %arg5: memref<1x1x256xf32, #tpu.memory_space<vmem>>, %arg6: memref<1x256x128xbf16, #tpu.memory_space<vmem>>, %arg7: memref<1x1x128xf32, #tpu.memory_space<vmem>>, %arg8: memref<1x256x128xbf16, #tpu.memory_space<vmem>>, %arg9: memref<1x1x128xf32, #tpu.memory_space<vmem>>, %arg10: memref<1x9x2x18xbf16, #tpu.memory_space<vmem>>, %arg11: memref<1x9x128x128xbf16, #tpu.memory_space<vmem>>, %arg12: memref<1x1x128xf32, #tpu.memory_space<vmem>>, %arg13: memref<2x128xf32, #tpu.memory_space<vmem>>, %arg14: memref<2x128xf32, #tpu.memory_space<vmem>>) attributes {dimension_semantics = [#tpu.dimension_semantics<parallel>], iteration_bounds = array<i64: 2>, scalar_prefetch = 0 : i64, scratch_operands = 0 : i64, tpu.core_type = #tpu.core_type<tc>, window_params = [{transform_indices = @transform_0, window_bounds = array<i64: 1, 2, 512>}, {transform_indices = @transform_1, window_bounds = array<i64: 1, 18, 128>}, {transform_indices = @transform_2, window_bounds = array<i64: 1, 512, 256>}, {transform_indices = @transform_3, window_bounds = array<i64: 1, 128, 256>}, {transform_indices = @transform_4, window_bounds = array<i64: 1, 1, 256>}, {transform_indices = @transform_5, window_bounds = array<i64: 1, 256, 128>}, {transform_indices = @transform_6, window_bounds = array<i64: 1, 1, 128>}, {transform_indices = @transform_7, window_bounds = array<i64: 1, 256, 128>}, {transform_indices = @transform_8, window_bounds = array<i64: 1, 1, 128>}, {transform_indices = @transform_9, window_bounds = array<i64: 1, 9, 2, 18>}, {transform_indices = @transform_10, window_bounds = array<i64: 1, 9, 128, 128>}, {transform_indices = @transform_11, window_bounds = array<i64: 1, 1, 128>}, {transform_indices = @transform_12, window_bounds = array<i64: 2, 128>}, {transform_indices = @transform_13, window_bounds = array<i64: 2, 128>}]} {
    %c0 = arith.constant 0 : index
    %c0_0 = arith.constant 0 : index
    %c0_1 = arith.constant 0 : index
    %0 = vector.load %arg1[%c0, %c0_0, %c0_1] : memref<1x2x512xbf16, #tpu.memory_space<vmem>>, vector<1x2x512xbf16>
    %1 = vector.shape_cast %0 : vector<1x2x512xbf16> to vector<2x512xbf16>
    %c0_2 = arith.constant 0 : index
    %c0_3 = arith.constant 0 : index
    %c0_4 = arith.constant 0 : index
    %2 = vector.load %arg3[%c0_2, %c0_3, %c0_4] : memref<1x512x256xbf16, #tpu.memory_space<vmem>>, vector<1x512x256xbf16>
    %3 = vector.shape_cast %2 : vector<1x512x256xbf16> to vector<512x256xbf16>
    %cst = arith.constant dense<0.000000e+00> : vector<2x256xf32>
    %4 = tpu.matmul %1, %3, %cst {dimension_numbers = #tpu.dot_dimension_numbers<[1], [0], [0], [1], [0, 0, 1, 1], [], []>} : vector<2x512xbf16>, vector<512x256xbf16>, vector<2x256xf32> -> vector<2x256xf32>
    %c0_5 = arith.constant 0 : index
    %c0_6 = arith.constant 0 : index
    %c0_7 = arith.constant 0 : index
    %5 = vector.load %arg5[%c0_5, %c0_6, %c0_7] : memref<1x1x256xf32, #tpu.memory_space<vmem>>, vector<1x1x256xf32>
    %6 = vector.shape_cast %5 : vector<1x1x256xf32> to vector<1x256xf32>
    %7 = vector.broadcast %6 : vector<1x256xf32> to vector<2x256xf32>
    %8 = arith.addf %4, %7 : vector<2x256xf32>
    %cst_8 = arith.constant 0.000000e+00 : f32
    %9 = vector.broadcast %cst_8 : f32 to vector<2x256xf32>
    %10 = arith.maximumf %8, %9 : vector<2x256xf32>
    %11 = arith.truncf %10 : vector<2x256xf32> to vector<2x256xbf16>
    %c0_9 = arith.constant 0 : index
    %c0_10 = arith.constant 0 : index
    %c0_11 = arith.constant 0 : index
    %12 = vector.load %arg6[%c0_9, %c0_10, %c0_11] : memref<1x256x128xbf16, #tpu.memory_space<vmem>>, vector<1x256x128xbf16>
    %13 = vector.shape_cast %12 : vector<1x256x128xbf16> to vector<256x128xbf16>
    %cst_12 = arith.constant dense<0.000000e+00> : vector<2x128xf32>
    %14 = tpu.matmul %11, %13, %cst_12 {dimension_numbers = #tpu.dot_dimension_numbers<[1], [0], [0], [1], [0, 0, 1, 1], [], []>} : vector<2x256xbf16>, vector<256x128xbf16>, vector<2x128xf32> -> vector<2x128xf32>
    %c0_13 = arith.constant 0 : index
    %c0_14 = arith.constant 0 : index
    %c0_15 = arith.constant 0 : index
    %15 = vector.load %arg7[%c0_13, %c0_14, %c0_15] : memref<1x1x128xf32, #tpu.memory_space<vmem>>, vector<1x1x128xf32>
    %16 = vector.shape_cast %15 : vector<1x1x128xf32> to vector<1x128xf32>
    %17 = vector.broadcast %16 : vector<1x128xf32> to vector<2x128xf32>
    %18 = arith.addf %14, %17 : vector<2x128xf32>
    %19 = arith.mulf %18, %18 : vector<2x128xf32>
    %cst_16 = arith.constant dense<0.000000e+00> : vector<2xf32>
    %20 = vector.multi_reduction <add>, %19, %cst_16 [1] : vector<2x128xf32> to vector<2xf32>
    %21 = vector.shape_cast %20 : vector<2xf32> to vector<2x1xf32>
    %cst_17 = arith.constant 1.000000e-24 : f32
    %22 = vector.broadcast %cst_17 : f32 to vector<2x1xf32>
    %23 = arith.maximumf %21, %22 : vector<2x1xf32>
    %24 = math.rsqrt %23 : vector<2x1xf32>
    %25 = vector.broadcast %24 : vector<2x1xf32> to vector<2x128xf32>
    %26 = arith.mulf %18, %25 : vector<2x128xf32>
    %c0_18 = arith.constant 0 : index
    %c0_19 = arith.constant 0 : index
    %27 = vector.load %arg13[%c0_18, %c0_19] : memref<2x128xf32, #tpu.memory_space<vmem>>, vector<2x128xf32>
    tpu.vector_store %arg13[%c0_18, %c0_19], %26 {strides = array<i32>} : memref<2x128xf32, #tpu.memory_space<vmem>>, vector<2x128xf32>,
    %c0_20 = arith.constant 0 : index
    %c0_21 = arith.constant 0 : index
    %c0_22 = arith.constant 0 : index
    %28 = vector.load %arg2[%c0_20, %c0_21, %c0_22] : memref<1x18x128xbf16, #tpu.memory_space<vmem>>, vector<1x18x128xbf16>
    %29 = vector.shape_cast %28 : vector<1x18x128xbf16> to vector<18x128xbf16>
    %c0_23 = arith.constant 0 : index
    %c0_24 = arith.constant 0 : index
    %c0_25 = arith.constant 0 : index
    %30 = vector.load %arg4[%c0_23, %c0_24, %c0_25] : memref<1x128x256xbf16, #tpu.memory_space<vmem>>, vector<1x128x256xbf16>
    %31 = vector.shape_cast %30 : vector<1x128x256xbf16> to vector<128x256xbf16>
    %cst_26 = arith.constant dense<0.000000e+00> : vector<18x256xf32>
    %32 = tpu.matmul %29, %31, %cst_26 {dimension_numbers = #tpu.dot_dimension_numbers<[1], [0], [0], [1], [0, 0, 1, 1], [], []>} : vector<18x128xbf16>, vector<128x256xbf16>, vector<18x256xf32> -> vector<18x256xf32>
    %c0_27 = arith.constant 0 : index
    %c0_28 = arith.constant 0 : index
    %c0_29 = arith.constant 0 : index
    %33 = vector.load %arg5[%c0_27, %c0_28, %c0_29] : memref<1x1x256xf32, #tpu.memory_space<vmem>>, vector<1x1x256xf32>
    %34 = vector.shape_cast %33 : vector<1x1x256xf32> to vector<1x256xf32>
    %35 = vector.broadcast %34 : vector<1x256xf32> to vector<18x256xf32>
    %36 = arith.addf %32, %35 : vector<18x256xf32>
    %cst_30 = arith.constant 0.000000e+00 : f32
    %37 = vector.broadcast %cst_30 : f32 to vector<18x256xf32>
    %38 = arith.maximumf %36, %37 : vector<18x256xf32>
    %39 = arith.truncf %38 : vector<18x256xf32> to vector<18x256xbf16>
    %c0_31 = arith.constant 0 : index
    %c0_32 = arith.constant 0 : index
    %c0_33 = arith.constant 0 : index
    %40 = vector.load %arg8[%c0_31, %c0_32, %c0_33] : memref<1x256x128xbf16, #tpu.memory_space<vmem>>, vector<1x256x128xbf16>
    %41 = vector.shape_cast %40 : vector<1x256x128xbf16> to vector<256x128xbf16>
    %cst_34 = arith.constant dense<0.000000e+00> : vector<18x128xf32>
    %42 = tpu.matmul %39, %41, %cst_34 {dimension_numbers = #tpu.dot_dimension_numbers<[1], [0], [0], [1], [0, 0, 1, 1], [], []>} : vector<18x256xbf16>, vector<256x128xbf16>, vector<18x128xf32> -> vector<18x128xf32>
    %c0_35 = arith.constant 0 : index
    %c0_36 = arith.constant 0 : index
    %c0_37 = arith.constant 0 : index
    %43 = vector.load %arg9[%c0_35, %c0_36, %c0_37] : memref<1x1x128xf32, #tpu.memory_space<vmem>>, vector<1x1x128xf32>
    %44 = vector.shape_cast %43 : vector<1x1x128xf32> to vector<1x128xf32>
    %45 = vector.broadcast %44 : vector<1x128xf32> to vector<18x128xf32>
    %46 = arith.addf %42, %45 : vector<18x128xf32>
    %47 = arith.truncf %46 : vector<18x128xf32> to vector<18x128xbf16>
    %cst_38 = arith.constant 0.000000e+00 : f32
    %48 = vector.broadcast %cst_38 : f32 to vector<2x128xf32>
    %c0_39 = arith.constant 0 : index
    %c0_40 = arith.constant 0 : index
    %c0_41 = arith.constant 0 : index
    %c0_42 = arith.constant 0 : index
    %49 = vector.load %arg10[%c0_39, %c0_40, %c0_41, %c0_42] : memref<1x9x2x18xbf16, #tpu.memory_space<vmem>>, vector<1x1x2x18xbf16>
    %50 = vector.shape_cast %49 : vector<1x1x2x18xbf16> to vector<2x18xbf16>
    %cst_43 = arith.constant dense<0.000000e+00> : vector<2x128xf32>
    %51 = tpu.matmul %50, %47, %cst_43 {dimension_numbers = #tpu.dot_dimension_numbers<[1], [0], [0], [1], [0, 0, 1, 1], [], []>} : vector<2x18xbf16>, vector<18x128xbf16>, vector<2x128xf32> -> vector<2x128xf32>
    %52 = arith.truncf %51 : vector<2x128xf32> to vector<2x128xbf16>
    %c0_44 = arith.constant 0 : index
    %c0_45 = arith.constant 0 : index
    %c0_46 = arith.constant 0 : index
    %c0_47 = arith.constant 0 : index
    %53 = vector.load %arg11[%c0_44, %c0_45, %c0_46, %c0_47] : memref<1x9x128x128xbf16, #tpu.memory_space<vmem>>, vector<1x1x128x128xbf16>
    %54 = vector.shape_cast %53 : vector<1x1x128x128xbf16> to vector<128x128xbf16>
    %cst_48 = arith.constant dense<0.000000e+00> : vector<2x128xf32>
    %55 = tpu.matmul %52, %54, %cst_48 {dimension_numbers = #tpu.dot_dimension_numbers<[1], [0], [0], [1], [0, 0, 1, 1], [], []>} : vector<2x128xbf16>, vector<128x128xbf16>, vector<2x128xf32> -> vector<2x128xf32>
    %56 = arith.addf %48, %55 : vector<2x128xf32>
    %c0_49 = arith.constant 0 : index
    %c1 = arith.constant 1 : index
    %c0_50 = arith.constant 0 : index
    %c0_51 = arith.constant 0 : index
    %57 = vector.load %arg10[%c0_49, %c1, %c0_50, %c0_51] : memref<1x9x2x18xbf16, #tpu.memory_space<vmem>>, vector<1x1x2x18xbf16>
    %58 = vector.shape_cast %57 : vector<1x1x2x18xbf16> to vector<2x18xbf16>
    %cst_52 = arith.constant dense<0.000000e+00> : vector<2x128xf32>
    %59 = tpu.matmul %58, %47, %cst_52 {dimension_numbers = #tpu.dot_dimension_numbers<[1], [0], [0], [1], [0, 0, 1, 1], [], []>} : vector<2x18xbf16>, vector<18x128xbf16>, vector<2x128xf32> -> vector<2x128xf32>
    %60 = arith.truncf %59 : vector<2x128xf32> to vector<2x128xbf16>
    %c0_53 = arith.constant 0 : index
    %c1_54 = arith.constant 1 : index
    %c0_55 = arith.constant 0 : index
    %c0_56 = arith.constant 0 : index
    %61 = vector.load %arg11[%c0_53, %c1_54, %c0_55, %c0_56] : memref<1x9x128x128xbf16, #tpu.memory_space<vmem>>, vector<1x1x128x128xbf16>
    %62 = vector.shape_cast %61 : vector<1x1x128x128xbf16> to vector<128x128xbf16>
    %cst_57 = arith.constant dense<0.000000e+00> : vector<2x128xf32>
    %63 = tpu.matmul %60, %62, %cst_57 {dimension_numbers = #tpu.dot_dimension_numbers<[1], [0], [0], [1], [0, 0, 1, 1], [], []>} : vector<2x128xbf16>, vector<128x128xbf16>, vector<2x128xf32> -> vector<2x128xf32>
    %64 = arith.addf %56, %63 : vector<2x128xf32>
    %c0_58 = arith.constant 0 : index
    %c2 = arith.constant 2 : index
    %c0_59 = arith.constant 0 : index
    %c0_60 = arith.constant 0 : index
    %65 = vector.load %arg10[%c0_58, %c2, %c0_59, %c0_60] : memref<1x9x2x18xbf16, #tpu.memory_space<vmem>>, vector<1x1x2x18xbf16>
    %66 = vector.shape_cast %65 : vector<1x1x2x18xbf16> to vector<2x18xbf16>
    %cst_61 = arith.constant dense<0.000000e+00> : vector<2x128xf32>
    %67 = tpu.matmul %66, %47, %cst_61 {dimension_numbers = #tpu.dot_dimension_numbers<[1], [0], [0], [1], [0, 0, 1, 1], [], []>} : vector<2x18xbf16>, vector<18x128xbf16>, vector<2x128xf32> -> vector<2x128xf32>
    %68 = arith.truncf %67 : vector<2x128xf32> to vector<2x128xbf16>
    %c0_62 = arith.constant 0 : index
    %c2_63 = arith.constant 2 : index
    %c0_64 = arith.constant 0 : index
    %c0_65 = arith.constant 0 : index
    %69 = vector.load %arg11[%c0_62, %c2_63, %c0_64, %c0_65] : memref<1x9x128x128xbf16, #tpu.memory_space<vmem>>, vector<1x1x128x128xbf16>
    %70 = vector.shape_cast %69 : vector<1x1x128x128xbf16> to vector<128x128xbf16>
    %cst_66 = arith.constant dense<0.000000e+00> : vector<2x128xf32>
    %71 = tpu.matmul %68, %70, %cst_66 {dimension_numbers = #tpu.dot_dimension_numbers<[1], [0], [0], [1], [0, 0, 1, 1], [], []>} : vector<2x128xbf16>, vector<128x128xbf16>, vector<2x128xf32> -> vector<2x128xf32>
    %72 = arith.addf %64, %71 : vector<2x128xf32>
    %c0_67 = arith.constant 0 : index
    %c3 = arith.constant 3 : index
    %c0_68 = arith.constant 0 : index
    %c0_69 = arith.constant 0 : index
    %73 = vector.load %arg10[%c0_67, %c3, %c0_68, %c0_69] : memref<1x9x2x18xbf16, #tpu.memory_space<vmem>>, vector<1x1x2x18xbf16>
    %74 = vector.shape_cast %73 : vector<1x1x2x18xbf16> to vector<2x18xbf16>
    %cst_70 = arith.constant dense<0.000000e+00> : vector<2x128xf32>
    %75 = tpu.matmul %74, %47, %cst_70 {dimension_numbers = #tpu.dot_dimension_numbers<[1], [0], [0], [1], [0, 0, 1, 1], [], []>} : vector<2x18xbf16>, vector<18x128xbf16>, vector<2x128xf32> -> vector<2x128xf32>
    %76 = arith.truncf %75 : vector<2x128xf32> to vector<2x128xbf16>
    %c0_71 = arith.constant 0 : index
    %c3_72 = arith.constant 3 : index
    %c0_73 = arith.constant 0 : index
    %c0_74 = arith.constant 0 : index
    %77 = vector.load %arg11[%c0_71, %c3_72, %c0_73, %c0_74] : memref<1x9x128x128xbf16, #tpu.memory_space<vmem>>, vector<1x1x128x128xbf16>
    %78 = vector.shape_cast %77 : vector<1x1x128x128xbf16> to vector<128x128xbf16>
    %cst_75 = arith.constant dense<0.000000e+00> : vector<2x128xf32>
    %79 = tpu.matmul %76, %78, %cst_75 {dimension_numbers = #tpu.dot_dimension_numbers<[1], [0], [0], [1], [0, 0, 1, 1], [], []>} : vector<2x128xbf16>, vector<128x128xbf16>, vector<2x128xf32> -> vector<2x128xf32>
    %80 = arith.addf %72, %79 : vector<2x128xf32>
    %c0_76 = arith.constant 0 : index
    %c4 = arith.constant 4 : index
    %c0_77 = arith.constant 0 : index
    %c0_78 = arith.constant 0 : index
    %81 = vector.load %arg10[%c0_76, %c4, %c0_77, %c0_78] : memref<1x9x2x18xbf16, #tpu.memory_space<vmem>>, vector<1x1x2x18xbf16>
    %82 = vector.shape_cast %81 : vector<1x1x2x18xbf16> to vector<2x18xbf16>
    %cst_79 = arith.constant dense<0.000000e+00> : vector<2x128xf32>
    %83 = tpu.matmul %82, %47, %cst_79 {dimension_numbers = #tpu.dot_dimension_numbers<[1], [0], [0], [1], [0, 0, 1, 1], [], []>} : vector<2x18xbf16>, vector<18x128xbf16>, vector<2x128xf32> -> vector<2x128xf32>
    %84 = arith.truncf %83 : vector<2x128xf32> to vector<2x128xbf16>
    %c0_80 = arith.constant 0 : index
    %c4_81 = arith.constant 4 : index
    %c0_82 = arith.constant 0 : index
    %c0_83 = arith.constant 0 : index
    %85 = vector.load %arg11[%c0_80, %c4_81, %c0_82, %c0_83] : memref<1x9x128x128xbf16, #tpu.memory_space<vmem>>, vector<1x1x128x128xbf16>
    %86 = vector.shape_cast %85 : vector<1x1x128x128xbf16> to vector<128x128xbf16>
    %cst_84 = arith.constant dense<0.000000e+00> : vector<2x128xf32>
    %87 = tpu.matmul %84, %86, %cst_84 {dimension_numbers = #tpu.dot_dimension_numbers<[1], [0], [0], [1], [0, 0, 1, 1], [], []>} : vector<2x128xbf16>, vector<128x128xbf16>, vector<2x128xf32> -> vector<2x128xf32>
    %88 = arith.addf %80, %87 : vector<2x128xf32>
    %c0_85 = arith.constant 0 : index
    %c5 = arith.constant 5 : index
    %c0_86 = arith.constant 0 : index
    %c0_87 = arith.constant 0 : index
    %89 = vector.load %arg10[%c0_85, %c5, %c0_86, %c0_87] : memref<1x9x2x18xbf16, #tpu.memory_space<vmem>>, vector<1x1x2x18xbf16>
    %90 = vector.shape_cast %89 : vector<1x1x2x18xbf16> to vector<2x18xbf16>
    %cst_88 = arith.constant dense<0.000000e+00> : vector<2x128xf32>
    %91 = tpu.matmul %90, %47, %cst_88 {dimension_numbers = #tpu.dot_dimension_numbers<[1], [0], [0], [1], [0, 0, 1, 1], [], []>} : vector<2x18xbf16>, vector<18x128xbf16>, vector<2x128xf32> -> vector<2x128xf32>
    %92 = arith.truncf %91 : vector<2x128xf32> to vector<2x128xbf16>
    %c0_89 = arith.constant 0 : index
    %c5_90 = arith.constant 5 : index
    %c0_91 = arith.constant 0 : index
    %c0_92 = arith.constant 0 : index
    %93 = vector.load %arg11[%c0_89, %c5_90, %c0_91, %c0_92] : memref<1x9x128x128xbf16, #tpu.memory_space<vmem>>, vector<1x1x128x128xbf16>
    %94 = vector.shape_cast %93 : vector<1x1x128x128xbf16> to vector<128x128xbf16>
    %cst_93 = arith.constant dense<0.000000e+00> : vector<2x128xf32>
    %95 = tpu.matmul %92, %94, %cst_93 {dimension_numbers = #tpu.dot_dimension_numbers<[1], [0], [0], [1], [0, 0, 1, 1], [], []>} : vector<2x128xbf16>, vector<128x128xbf16>, vector<2x128xf32> -> vector<2x128xf32>
    %96 = arith.addf %88, %95 : vector<2x128xf32>
    %c0_94 = arith.constant 0 : index
    %c6 = arith.constant 6 : index
    %c0_95 = arith.constant 0 : index
    %c0_96 = arith.constant 0 : index
    %97 = vector.load %arg10[%c0_94, %c6, %c0_95, %c0_96] : memref<1x9x2x18xbf16, #tpu.memory_space<vmem>>, vector<1x1x2x18xbf16>
    %98 = vector.shape_cast %97 : vector<1x1x2x18xbf16> to vector<2x18xbf16>
    %cst_97 = arith.constant dense<0.000000e+00> : vector<2x128xf32>
    %99 = tpu.matmul %98, %47, %cst_97 {dimension_numbers = #tpu.dot_dimension_numbers<[1], [0], [0], [1], [0, 0, 1, 1], [], []>} : vector<2x18xbf16>, vector<18x128xbf16>, vector<2x128xf32> -> vector<2x128xf32>
    %100 = arith.truncf %99 : vector<2x128xf32> to vector<2x128xbf16>
    %c0_98 = arith.constant 0 : index
    %c6_99 = arith.constant 6 : index
    %c0_100 = arith.constant 0 : index
    %c0_101 = arith.constant 0 : index
    %101 = vector.load %arg11[%c0_98, %c6_99, %c0_100, %c0_101] : memref<1x9x128x128xbf16, #tpu.memory_space<vmem>>, vector<1x1x128x128xbf16>
    %102 = vector.shape_cast %101 : vector<1x1x128x128xbf16> to vector<128x128xbf16>
    %cst_102 = arith.constant dense<0.000000e+00> : vector<2x128xf32>
    %103 = tpu.matmul %100, %102, %cst_102 {dimension_numbers = #tpu.dot_dimension_numbers<[1], [0], [0], [1], [0, 0, 1, 1], [], []>} : vector<2x128xbf16>, vector<128x128xbf16>, vector<2x128xf32> -> vector<2x128xf32>
    %104 = arith.addf %96, %103 : vector<2x128xf32>
    %c0_103 = arith.constant 0 : index
    %c7 = arith.constant 7 : index
    %c0_104 = arith.constant 0 : index
    %c0_105 = arith.constant 0 : index
    %105 = vector.load %arg10[%c0_103, %c7, %c0_104, %c0_105] : memref<1x9x2x18xbf16, #tpu.memory_space<vmem>>, vector<1x1x2x18xbf16>
    %106 = vector.shape_cast %105 : vector<1x1x2x18xbf16> to vector<2x18xbf16>
    %cst_106 = arith.constant dense<0.000000e+00> : vector<2x128xf32>
    %107 = tpu.matmul %106, %47, %cst_106 {dimension_numbers = #tpu.dot_dimension_numbers<[1], [0], [0], [1], [0, 0, 1, 1], [], []>} : vector<2x18xbf16>, vector<18x128xbf16>, vector<2x128xf32> -> vector<2x128xf32>
    %108 = arith.truncf %107 : vector<2x128xf32> to vector<2x128xbf16>
    %c0_107 = arith.constant 0 : index
    %c7_108 = arith.constant 7 : index
    %c0_109 = arith.constant 0 : index
    %c0_110 = arith.constant 0 : index
    %109 = vector.load %arg11[%c0_107, %c7_108, %c0_109, %c0_110] : memref<1x9x128x128xbf16, #tpu.memory_space<vmem>>, vector<1x1x128x128xbf16>
    %110 = vector.shape_cast %109 : vector<1x1x128x128xbf16> to vector<128x128xbf16>
    %cst_111 = arith.constant dense<0.000000e+00> : vector<2x128xf32>
    %111 = tpu.matmul %108, %110, %cst_111 {dimension_numbers = #tpu.dot_dimension_numbers<[1], [0], [0], [1], [0, 0, 1, 1], [], []>} : vector<2x128xbf16>, vector<128x128xbf16>, vector<2x128xf32> -> vector<2x128xf32>
    %112 = arith.addf %104, %111 : vector<2x128xf32>
    %c0_112 = arith.constant 0 : index
    %c8 = arith.constant 8 : index
    %c0_113 = arith.constant 0 : index
    %c0_114 = arith.constant 0 : index
    %113 = vector.load %arg10[%c0_112, %c8, %c0_113, %c0_114] : memref<1x9x2x18xbf16, #tpu.memory_space<vmem>>, vector<1x1x2x18xbf16>
    %114 = vector.shape_cast %113 : vector<1x1x2x18xbf16> to vector<2x18xbf16>
    %cst_115 = arith.constant dense<0.000000e+00> : vector<2x128xf32>
    %115 = tpu.matmul %114, %47, %cst_115 {dimension_numbers = #tpu.dot_dimension_numbers<[1], [0], [0], [1], [0, 0, 1, 1], [], []>} : vector<2x18xbf16>, vector<18x128xbf16>, vector<2x128xf32> -> vector<2x128xf32>
    %116 = arith.truncf %115 : vector<2x128xf32> to vector<2x128xbf16>
    %c0_116 = arith.constant 0 : index
    %c8_117 = arith.constant 8 : index
    %c0_118 = arith.constant 0 : index
    %c0_119 = arith.constant 0 : index
    %117 = vector.load %arg11[%c0_116, %c8_117, %c0_118, %c0_119] : memref<1x9x128x128xbf16, #tpu.memory_space<vmem>>, vector<1x1x128x128xbf16>
    %118 = vector.shape_cast %117 : vector<1x1x128x128xbf16> to vector<128x128xbf16>
    %cst_120 = arith.constant dense<0.000000e+00> : vector<2x128xf32>
    %119 = tpu.matmul %116, %118, %cst_120 {dimension_numbers = #tpu.dot_dimension_numbers<[1], [0], [0], [1], [0, 0, 1, 1], [], []>} : vector<2x128xbf16>, vector<128x128xbf16>, vector<2x128xf32> -> vector<2x128xf32>
    %120 = arith.addf %112, %119 : vector<2x128xf32>
    %c0_121 = arith.constant 0 : index
    %c0_122 = arith.constant 0 : index
    %c0_123 = arith.constant 0 : index
    %121 = vector.load %arg12[%c0_121, %c0_122, %c0_123] : memref<1x1x128xf32, #tpu.memory_space<vmem>>, vector<1x1x128xf32>
    %122 = vector.shape_cast %121 : vector<1x1x128xf32> to vector<1x128xf32>
    %123 = vector.broadcast %122 : vector<1x128xf32> to vector<2x128xf32>
    %124 = arith.addf %120, %123 : vector<2x128xf32>
    %125 = arith.mulf %124, %124 : vector<2x128xf32>
    %cst_124 = arith.constant dense<0.000000e+00> : vector<2xf32>
    %126 = vector.multi_reduction <add>, %125, %cst_124 [1] : vector<2x128xf32> to vector<2xf32>
    %127 = vector.shape_cast %126 : vector<2xf32> to vector<2x1xf32>
    %cst_125 = arith.constant 1.000000e-24 : f32
    %128 = vector.broadcast %cst_125 : f32 to vector<2x1xf32>
    %129 = arith.maximumf %127, %128 : vector<2x1xf32>
    %130 = math.rsqrt %129 : vector<2x1xf32>
    %131 = vector.broadcast %130 : vector<2x1xf32> to vector<2x128xf32>
    %132 = arith.mulf %124, %131 : vector<2x128xf32>
    %c0_126 = arith.constant 0 : index
    %c0_127 = arith.constant 0 : index
    %133 = vector.load %arg14[%c0_126, %c0_127] : memref<2x128xf32, #tpu.memory_space<vmem>>, vector<2x128xf32>
    tpu.vector_store %arg14[%c0_126, %c0_127], %132 {strides = array<i32>} : memref<2x128xf32, #tpu.memory_space<vmem>>, vector<2x128xf32>,
    return
  }
  func.func @transform_0(%arg0: i32) -> (i32, i32, i32) {
    %c0_i32 = arith.constant 0 : i32
    %c0_i32_0 = arith.constant 0 : i32
    %c0_i32_1 = arith.constant 0 : i32
    return %arg0, %c0_i32, %c0_i32_0 : i32, i32, i32
  }
  func.func @transform_1(%arg0: i32) -> (i32, i32, i32) {
    %c0_i32 = arith.constant 0 : i32
    %c0_i32_0 = arith.constant 0 : i32
    %c0_i32_1 = arith.constant 0 : i32
    return %arg0, %c0_i32, %c0_i32_0 : i32, i32, i32
  }
  func.func @transform_2(%arg0: i32) -> (i32, i32, i32) {
    %c0_i32 = arith.constant 0 : i32
    %c0_i32_0 = arith.constant 0 : i32
    %c0_i32_1 = arith.constant 0 : i32
    return %arg0, %c0_i32, %c0_i32_0 : i32, i32, i32
  }
  func.func @transform_3(%arg0: i32) -> (i32, i32, i32) {
    %c0_i32 = arith.constant 0 : i32
    %c0_i32_0 = arith.constant 0 : i32
    %c0_i32_1 = arith.constant 0 : i32
    return %arg0, %c0_i32, %c0_i32_0 : i32, i32, i32
  }
  func.func @transform_4(%arg0: i32) -> (i32, i32, i32) {
    %c0_i32 = arith.constant 0 : i32
    %c0_i32_0 = arith.constant 0 : i32
    %c0_i32_1 = arith.constant 0 : i32
    return %arg0, %c0_i32, %c0_i32_0 : i32, i32, i32
  }
  func.func @transform_5(%arg0: i32) -> (i32, i32, i32) {
    %c0_i32 = arith.constant 0 : i32
    %c0_i32_0 = arith.constant 0 : i32
    %c0_i32_1 = arith.constant 0 : i32
    return %arg0, %c0_i32, %c0_i32_0 : i32, i32, i32
  }
  func.func @transform_6(%arg0: i32) -> (i32, i32, i32) {
    %c0_i32 = arith.constant 0 : i32
    %c0_i32_0 = arith.constant 0 : i32
    %c0_i32_1 = arith.constant 0 : i32
    return %arg0, %c0_i32, %c0_i32_0 : i32, i32, i32
  }
  func.func @transform_7(%arg0: i32) -> (i32, i32, i32) {
    %c0_i32 = arith.constant 0 : i32
    %c0_i32_0 = arith.constant 0 : i32
    %c0_i32_1 = arith.constant 0 : i32
    return %arg0, %c0_i32, %c0_i32_0 : i32, i32, i32
  }
  func.func @transform_8(%arg0: i32) -> (i32, i32, i32) {
    %c0_i32 = arith.constant 0 : i32
    %c0_i32_0 = arith.constant 0 : i32
    %c0_i32_1 = arith.constant 0 : i32
    return %arg0, %c0_i32, %c0_i32_0 : i32, i32, i32
  }
  func.func @transform_9(%arg0: i32) -> (i32, i32, i32, i32) {
    %c0_i32 = arith.constant 0 : i32
    %c0_i32_0 = arith.constant 0 : i32
    %c0_i32_1 = arith.constant 0 : i32
    %c0_i32_2 = arith.constant 0 : i32
    return %arg0, %c0_i32, %c0_i32_0, %c0_i32_1 : i32, i32, i32, i32
  }
  func.func @transform_10(%arg0: i32) -> (i32, i32, i32, i32) {
    %c0_i32 = arith.constant 0 : i32
    %c0_i32_0 = arith.constant 0 : i32
    %c0_i32_1 = arith.constant 0 : i32
    %c0_i32_2 = arith.constant 0 : i32
    return %arg0, %c0_i32, %c0_i32_0, %c0_i32_1 : i32, i32, i32, i32
  }
  func.func @transform_11(%arg0: i32) -> (i32, i32, i32) {
    %c0_i32 = arith.constant 0 : i32
    %c0_i32_0 = arith.constant 0 : i32
    %c0_i32_1 = arith.constant 0 : i32
    return %arg0, %c0_i32, %c0_i32_0 : i32, i32, i32
  }
  func.func @transform_12(%arg0: i32) -> (i32, i32) {
    %c0_i32 = arith.constant 0 : i32
    %c0_i32_0 = arith.constant 0 : i32
    return %c0_i32, %arg0 : i32, i32
  }
  func.func @transform_13(%arg0: i32) -> (i32, i32) {
    %c0_i32 = arith.constant 0 : i32
    %c0_i32_0 = arith.constant 0 : i32
    return %c0_i32, %arg0 : i32, i32
  }
}

</mosaic_0001>

<bundles_post_ra>
// kernel: cmc_multiheads_forward.1
= control target key start
LH: loop header
LB: loop body
LE: loop exit
PB: predicated region body
PF: predicated region fallthrough
CT: control target
= control target key end

     0   :  { %s5119_s0 = inlined_call_operand.vmem [shape: bf16[2,2,512], index: 0, kind: input, shape index: {}]   ;;  %s5120_s1 = inlined_call_operand.vmem [shape: bf16[2,18,128], index: 1, kind: input, shape index: {}]   ;;  %s5121_s2 = inlined_call_operand.vmem [shape: bf16[2,512,256], index: 2, kind: input, shape index: {}]   ;;  %s5122_s3 = inlined_call_operand.vmem [shape: bf16[2,128,256], index: 3, kind: input, shape index: {}]   ;;  %s5123_s4 = inlined_call_operand.vmem [shape: f32[2,1,256], index: 4, kind: input, shape index: {}]   ;;  %s5124_s5 = inlined_call_operand.vmem [shape: bf16[2,256,128], index: 5, kind: input, shape index: {}]   ;;  %s5125_s6 = inlined_call_operand.vmem [shape: f32[2,1,128], index: 6, kind: input, shape index: {}]   ;;  %s5126_s7 = inlined_call_operand.vmem [shape: bf16[2,256,128], index: 7, kind: input, shape index: {}]   ;;  %s5127_s8 = inlined_call_operand.vmem [shape: f32[2,1,128], index: 8, kind: input, shape index: {}]   ;;  %s5128_s9 = inlined_call_operand.vmem [shape: bf16[2,9,2,18], index: 9, kind: input, shape index: {}]   ;;  %s5129_s10 = inlined_call_operand.vmem [shape: bf16[2,9,128,128], index: 10, kind: input, shape index: {}]   ;;  %s5130_s11 = inlined_call_operand.vmem [shape: f32[2,1,128], index: 11, kind: input, shape index: {}]   ;;  %s5131_s12 = inlined_call_operand.hbm [shape: f32[2,256], index: 12, kind: output, shape index: {0}]   ;;  %s5132_s13 = inlined_call_operand.hbm [shape: f32[2,256], index: 13, kind: output, shape index: {1}]  }
   0x1   :  { %5135 = sst [smem:[#allocation9_spill]] %s5119_s0 }
   0x2   :  { %5136 = sst [smem:[#allocation10_spill]] %s5120_s1 }
   0x3   :  { %5137 = sst [smem:[#allocation11_spill]] %s5121_s2 }
   0x4   :  { %5138 = sst [smem:[#allocation12_spill]] %s5122_s3 }
   0x5   :  { %5139 = sst [smem:[#allocation13_spill]] %s5123_s4 }
   0x6   :  { %19 = vsyncpa [#allocation3], 0 }
   0x7   :  { %21 = vsyncpa [#allocation3 + $0x1], 0 }
   0x8   :  { %22 = vsyncpa [#allocation5], 0 }
   0x9   :  { %24 = vsyncpa [#allocation5 + $0x1], 0  ;;  %s4560_s25 = smov 0   ;;  %s4562_s26 = smov 0  }
   0xa   :  { %s4564_s27 = smov 0   ;;  %s4566_s28 = smov 0  }
   0xb LB: > { %s4581_s29 = sadd.s32 4294967295, %s4482_s28   ;;  %s3338_s30 = sadd.s32 4294967294, %s4482_s28   ;;  %s4482_s28 = sphi %s4566_s28, %s5154_s28   ;;  %s4478_s27 = sphi %s4564_s27, %s5153_s27   ;;  %s4474_s26 = sphi %s4562_s26, %s5152_s26   ;;  %s4470_s25 = sphi %s4560_s25, %s5151_s25  }
   0xc   : > { %s4585_s14 = sadd.s32 1, %s4482_s28   ;;  %s349_s15 = sadd.s32 1, %s4478_s27 }
   0xd   : > { %s346_s16 = ssub.s32 %s4482_s28, %s4585_s14  ;;  %p359_p0 = scmp.ne.s32.totalorder %s4478_s27, %s4474_s26 }
   0xe   : > { %p347_p1 = scmp.eq.s32.totalorder %s346_s16, 0  ;;  %p360_p2 = scmp.eq.s32.totalorder %s4581_s29, 1 }
   0xf   : > { %p365_p3 = scmp.ne.s32.totalorder %s4474_s26, %s4470_s25  ;;  %p366_p4 = scmp.eq.s32.totalorder %s3338_s30, 1 }
  0x10   : > { %s4596_s17 = scalar_select %p347_p1, %s4478_s27, %s349_s15  }
  0x11   : > { %p4598_p5 = por %p360_p2, %p359_p0  ;;  %p4602_p6 = por %p366_p4, %p365_p3 }
  0x12   : > { %5140 = sst [smem:[#allocation8_spill]] %s4596_s17  ;;  %p3341_p7 = scmp.ge.s32.totalorder %s4482_s28, 1 }
  0x13   : > { %p497_p8 = scmp.lt.s32.totalorder %s4482_s28, 3 }
  0x15   : > { %p498_p9 = pnand %p3341_p7, %p497_p8 }
  0x16   : > { %p592_p10 = scmp.lt.s32.totalorder (!%p498_p9), %s4581_s29, 1  ;;  %s5143_s2 = sld [smem:[#allocation11_spill]] (!%p498_p9) }
  0x17   : > { %501 = sbr.rel (%p498_p9) target bundleno = 1953 (0x7a1), region = 68  ;;  %s5144_s0 = sld [smem:[#allocation9_spill]] (!%p498_p9) }
  0x18   : > { %s5145_s3 = sld [smem:[#allocation12_spill]] (!%p498_p9) }
  0x19   : > { %s5146_s1 = sld [smem:[#allocation10_spill]] (!%p498_p9) }
  0x1a   : > { %s5147_s4 = sld [smem:[#allocation13_spill]] (!%p498_p9) }
  0x1c   : > { %s4610_s20 = scalar_select %p592_p10, %s4581_s29, 1  ;;  %v711_v38 = vlaneseq  ;;  %v4484_v39 = vmov 1966171168   ;;  %vm4487_vm0 = vmmov 0   ;;  %vm1332_vm1 = vcmask 1041408  }
  0x1d   : > { %v731_v40 = vunpack.c.l.s4 %v4484_v39  ;;  %vm1712_vm2 = vcmask 1040384   ;;  %vm1708_vm3 = vcmask 146432  }
  0x1e   : > { %s3697_s21 = sshll.u32 %s4610_s20, 9  ;;  %s3344_s30 = sshll.u32 %s4610_s20, 2  ;;  %v4661_v45 = vshrl.u32 %v711_v38, 7 }
  0x1f   : > { %s4616_s24 = scalar_lea.vmem %s5143_s2, %s3697_s21  ;;  %v732_v46 = vunpack.c.0.s8 %v731_v40  ;;  %s4664_s15 = sshll.u32 %s4610_s20, 7 }
  0x20   : > { %v4162_v0 = vld [vmem:[%s4616_s24 + $0x74] ss:$8 sps:$4 sm:$0xff]   ;;  %v4166_v2 = vld [vmem:[%s4616_s24 + $0x70] ss:$8 sps:$4 sm:$0xff]   ;;  %v4168_v4 = vld [vmem:[%s4616_s24 + $0x64] ss:$8 sps:$4 sm:$0xff]   ;;  %s595_s22 = scalar_lea.vmem %s5144_s0, %s3344_s30  ;;  %s4677_s17 = scalar_lea.vmem %s5145_s3, %s4664_s15 }
  0x21   : > { %v4164_v1 = vld [vmem:[%s4616_s24 + $0x174] ss:$8 sps:$4 sm:$0xff]   ;;  %1070 = vmatprep.subr.bf16.mxu0 %v4162_v0  ;;  %v4167_v3 = vld [vmem:[%s4616_s24 + $0x170] ss:$8 sps:$4 sm:$0xff]   ;;  %v4170_v5 = vld [vmem:[%s4616_s24 + $0x164] ss:$8 sps:$4 sm:$0xff]   ;;  %v735_v51 = vsub.s32 %v732_v46, %v4661_v45  ;;  %s4703_s0 = scalar_lea.vmem %s5124_s5, %s4664_s15  ;;  %s4724_s16 = scalar_lea.vmem %s5126_s7, %s4664_s15 }
  0x22   : > { %1111 = vmatprep.subr.bf16.mxu1 %v4164_v1  ;;  %1071 = vmatpush1.bf16.msra.mxu0 %v4166_v2  ;;  %v4172_v6 = vld [vmem:[%s4616_s24 + $0x60] ss:$8 sps:$4 sm:$0xff]   ;;  %v4174_v8 = vld [vmem:[%s4616_s24 + $0x54] ss:$8 sps:$4 sm:$0xff]   ;;  %v4178_v10 = vld [vmem:[%s4616_s24 + $0x50] ss:$8 sps:$4 sm:$0xff]  }
  0x23   : > { %1112 = vmatpush1.bf16.msra.mxu1 %v4167_v3  ;;  %1072 = vmatprep.subr.bf16.mxu0 %v4168_v4  ;;  %v4173_v7 = vld [vmem:[%s4616_s24 + $0x160] ss:$8 sps:$4 sm:$0xff]   ;;  %v4176_v9 = vld [vmem:[%s4616_s24 + $0x154] ss:$8 sps:$4 sm:$0xff]   ;;  %v4179_v11 = vld [vmem:[%s4616_s24 + $0x150] ss:$8 sps:$4 sm:$0xff]  }
  0x24   : > { %1113 = vmatprep.subr.bf16.mxu1 %v4170_v5  ;;  %v4180_v12 = vld [vmem:[%s4616_s24 + $0x44] ss:$8 sps:$4 sm:$0xff]   ;;  %v4184_v14 = vld [vmem:[%s4616_s24 + $0x40] ss:$8 sps:$4 sm:$0xff]   ;;  %v4186_v16 = vld [vmem:[%s4616_s24 + $0x34] ss:$8 sps:$4 sm:$0xff]  }
  0x25   : > { %v4182_v13 = vld [vmem:[%s4616_s24 + $0x144] ss:$8 sps:$4 sm:$0xff]   ;;  %v4185_v15 = vld [vmem:[%s4616_s24 + $0x140] ss:$8 sps:$4 sm:$0xff]   ;;  %v4188_v17 = vld [vmem:[%s4616_s24 + $0x134] ss:$8 sps:$4 sm:$0xff]  }
  0x26   : > { %1073 = vmatpush1.bf16.msra.mxu0 %v4172_v6  ;;  %v4190_v18 = vld [vmem:[%s4616_s24 + $0x30] ss:$8 sps:$4 sm:$0xff]   ;;  %v4192_v20 = vld [vmem:[%s4616_s24 + $0x24] ss:$8 sps:$4 sm:$0xff]   ;;  %v4196_v22 = vld [vmem:[%s4616_s24 + $0x20] ss:$8 sps:$4 sm:$0xff]  }
  0x27   : > { %1114 = vmatpush1.bf16.msra.mxu1 %v4173_v7  ;;  %1074 = vmatprep.subr.bf16.mxu0 %v4174_v8  ;;  %v4191_v19 = vld [vmem:[%s4616_s24 + $0x130] ss:$8 sps:$4 sm:$0xff]   ;;  %v4194_v21 = vld [vmem:[%s4616_s24 + $0x124] ss:$8 sps:$4 sm:$0xff]   ;;  %v4197_v23 = vld [vmem:[%s4616_s24 + $0x120] ss:$8 sps:$4 sm:$0xff]  }
  0x28   : > { %1115 = vmatprep.subr.bf16.mxu1 %v4176_v9  ;;  %v4198_v24 = vld [vmem:[%s4616_s24 + $0x14] ss:$8 sps:$4 sm:$0xff]   ;;  %v4202_v26 = vld [vmem:[%s4616_s24 + $0x10] ss:$8 sps:$4 sm:$0xff]   ;;  %v4204_v28 = vld [vmem:[%s4616_s24 + $0x4] ss:$8 sps:$4 sm:$0xff]  }
  0x29   : > { %v4200_v25 = vld [vmem:[%s4616_s24 + $0x114] ss:$8 sps:$4 sm:$0xff]   ;;  %v4203_v27 = vld [vmem:[%s4616_s24 + $0x110] ss:$8 sps:$4 sm:$0xff]   ;;  %v4206_v29 = vld [vmem:[%s4616_s24 + $0x104] ss:$8 sps:$4 sm:$0xff]  }
  0x2a   : > { %1075 = vmatpush1.bf16.msra.mxu0 %v4178_v10  ;;  %v4208_v30 = vld [vmem:[%s4616_s24] ss:$8 sps:$4 sm:$0xff]   ;;  %v4210_v32 = vld [vmem:[%s4616_s24 + $0xf4] ss:$8 sps:$4 sm:$0xff]   ;;  %v4214_v34 = vld [vmem:[%s4616_s24 + $0xf0] ss:$8 sps:$4 sm:$0xff]  }
  0x2b   : > { %1116 = vmatpush1.bf16.msra.mxu1 %v4179_v11  ;;  %1076 = vmatprep.subr.bf16.mxu0 %v4180_v12  ;;  %v4209_v31 = vld [vmem:[%s4616_s24 + $0x100] ss:$8 sps:$4 sm:$0xff]   ;;  %v4212_v33 = vld [vmem:[%s4616_s24 + $0x1f4] ss:$8 sps:$4 sm:$0xff]   ;;  %v4215_v35 = vld [vmem:[%s4616_s24 + $0x1f0] ss:$8 sps:$4 sm:$0xff]  }
  0x2c   : > { %1117 = vmatprep.subr.bf16.mxu1 %v4182_v13  ;;  %v4216_v36 = vld [vmem:[%s4616_s24 + $0xe4] ss:$8 sps:$4 sm:$0xff]   ;;  %v4220_v41 = vld [vmem:[%s4616_s24 + $0xe0] ss:$8 sps:$4 sm:$0xff]   ;;  %v4222_v43 = vld [vmem:[%s4616_s24 + $0xd4] ss:$8 sps:$4 sm:$0xff]  }
  0x2d   : > { %v4218_v37 = vld [vmem:[%s4616_s24 + $0x1e4] ss:$8 sps:$4 sm:$0xff]   ;;  %v4221_v42 = vld [vmem:[%s4616_s24 + $0x1e0] ss:$8 sps:$4 sm:$0xff]   ;;  %v4224_v44 = vld [vmem:[%s4616_s24 + $0x1d4] ss:$8 sps:$4 sm:$0xff]  }
  0x2e   : > { %1077 = vmatpush1.bf16.msra.mxu0 %v4184_v14  ;;  %v4226_v47 = vld [vmem:[%s4616_s24 + $0xd0] ss:$8 sps:$4 sm:$0xff]   ;;  %v4228_v49 = vld [vmem:[%s4616_s24 + $0xc4] ss:$8 sps:$4 sm:$0xff]   ;;  %v4232_v53 = vld [vmem:[%s4616_s24 + $0xc0] ss:$8 sps:$4 sm:$0xff]  }
  0x2f   : > { %1118 = vmatpush1.bf16.msra.mxu1 %v4185_v15  ;;  %1078 = vmatprep.subr.bf16.mxu0 %v4186_v16  ;;  %v4227_v48 = vld [vmem:[%s4616_s24 + $0x1d0] ss:$8 sps:$4 sm:$0xff]   ;;  %v4230_v50 = vld [vmem:[%s4616_s24 + $0x1c4] ss:$8 sps:$4 sm:$0xff]   ;;  %v4233_v54 = vld [vmem:[%s4616_s24 + $0x1c0] ss:$8 sps:$4 sm:$0xff]  }
  0x30   : > { %1119 = vmatprep.subr.bf16.mxu1 %v4188_v17  ;;  %v3356_v52 = vld.sshfl [vmem:[%s595_s22] sm:$0x33 pattern:$0x75316420]  ;;  %v4234_v56 = vld [vmem:[%s4616_s24 + $0xb4] ss:$8 sps:$4 sm:$0xff]  }
  0x31   : > { %v729_v55 = vcombine.high %v3356_v52, %v3356_v52  ;;  %v4236_v57 = vld [vmem:[%s4616_s24 + $0x1b4] ss:$8 sps:$4 sm:$0xff]   ;;  %v4238_v59 = vld [vmem:[%s4616_s24 + $0xb0] ss:$8 sps:$4 sm:$0xff]   ;;  %s4111_s2 = smul.u32 12, %s4610_s20  ;;  %v736_v10 = vrot.slane %v3356_v52, %v735_v51  ;;  %v4298_v46 = vld [vmem:[%s4703_s0 + $0x40] sm:$0xff]  }
  0x32   : > { %1079 = vmatpush1.bf16.msra.mxu0 %v4190_v18  ;;  %v4239_v60 = vld [vmem:[%s4616_s24 + $0x1b0] ss:$8 sps:$4 sm:$0xff]   ;;  %v4240_v62 = vld [vmem:[%s4616_s24 + $0xa4] ss:$8 sps:$4 sm:$0xff]   ;;  %v4244_v0 = vld [vmem:[%s4616_s24 + $0xa0] ss:$8 sps:$4 sm:$0xff]  }
  0x33   : > { %1120 = vmatpush1.bf16.msra.mxu1 %v4191_v19  ;;  %1080 = vmatprep.subr.bf16.mxu0 %v4192_v20  ;;  %v743_v58 = vrot.slane %v729_v55, %v735_v51  ;;  %v4242_v63 = vld [vmem:[%s4616_s24 + $0x1a4] ss:$8 sps:$4 sm:$0xff]   ;;  %v4245_v1 = vld [vmem:[%s4616_s24 + $0x1a0] ss:$8 sps:$4 sm:$0xff]   ;;  %s4694_s21 = scalar_lea.vmem %s5146_s1, %s4111_s2  ;;  %v4246_v2 = vld [vmem:[%s4616_s24 + $0x94] ss:$8 sps:$4 sm:$0xff]   ;;  %v744_v13 = vcombine.high %v736_v10, %v736_v10 }
  0x34   : > { %1121 = vmatprep.subr.bf16.mxu1 %v4194_v21  ;;  %v4248_v3 = vld [vmem:[%s4616_s24 + $0x194] ss:$8 sps:$4 sm:$0xff]   ;;  %v4250_v4 = vld [vmem:[%s4616_s24 + $0x90] ss:$8 sps:$4 sm:$0xff]   ;;  %v4252_v6 = vld [vmem:[%s4616_s24 + $0x84] ss:$8 sps:$4 sm:$0xff]  }
  0x35   : > { %v745_v61 = vcombine.high %v743_v58, %v743_v58  ;;  %1102 = vmatprep.mubr.bf16.mxu0 %v743_v58  ;;  %v4251_v5 = vld [vmem:[%s4616_s24 + $0x190] ss:$8 sps:$4 sm:$0xff]   ;;  %v4254_v7 = vld [vmem:[%s4616_s24 + $0x184] ss:$8 sps:$4 sm:$0xff]   ;;  %v4256_v8 = vld [vmem:[%s4616_s24 + $0x80] ss:$8 sps:$4 sm:$0xff]  }
  0x36   : > { %1081 = vmatpush1.bf16.msra.mxu0 %v4196_v22  ;;  %v4257_v9 = vld [vmem:[%s4616_s24 + $0x180] ss:$8 sps:$4 sm:$0xff]   ;;  %v4260_v11 = vld [vmem:[%s4677_s17 + $0x74] ss:$8 sps:$4 sm:$0xff]   ;;  %v4258_v14 = vld [vmem:[%s4677_s17 + $0x70] ss:$8 sps:$4 sm:$0xff]  }
  0x37   : > { %1122 = vmatpush1.bf16.msra.mxu1 %v4197_v23  ;;  %1082 = vmatprep.subr.bf16.mxu0 %v4198_v24  ;;  %v4284_v12 = vld [vmem:[%s4703_s0 + $0x78] sm:$0xff]   ;;  %v4263_v15 = vld [vmem:[%s4677_s17 + $0x64] ss:$8 sps:$4 sm:$0xff]   ;;  %s4113_s24 = smul.u32 576, %s4610_s20  ;;  %v4286_v17 = vld [vmem:[%s4703_s0 + $0x70] sm:$0xff]   ;;  %v4485_v21 = vmov 0  }
  0x38   : > { %1123 = vmatprep.subr.bf16.mxu1 %v4200_v25  ;;  %1143 = vmatprep.mubr.bf16.mxu1 %v745_v61  ;;  %v4285_v16 = vld [vmem:[%s4703_s0 + $0x38] sm:$0xff]   ;;  %v4261_v18 = vld [vmem:[%s4677_s17 + $0x60] ss:$8 sps:$4 sm:$0xff]   ;;  %v4287_v20 = vld [vmem:[%s4703_s0 + $0x30] sm:$0xff]   ;;  %v717_v51 = vsub.s32 1, %v4661_v45  ;;  %s4862_s30 = sand.u32 1, %s4474_s26  }
  0x39   : > { %v4266_v19 = vld [vmem:[%s4677_s17 + $0x54] ss:$8 sps:$4 sm:$0xff]   ;;  %v4288_v22 = vld [vmem:[%s4703_s0 + $0x68] sm:$0xff]   ;;  %v4264_v23 = vld [vmem:[%s4677_s17 + $0x50] ss:$8 sps:$4 sm:$0xff]   ;;  %s4741_s23 = scalar_lea.vmem %s5129_s10, %s4113_s24  ;;  %s4112_s24 = smul.u32 9, %s4610_s20 }
  0x3a   : > { %1083 = vmatpush1.bf16.msra.mxu0 %v4202_v26  ;;  %v4269_v24 = vld [vmem:[%s4677_s17 + $0x44] ss:$8 sps:$4 sm:$0xff]   ;;  %v4279_v38 = vld [vmem:[%s4677_s17] ss:$8 sps:$4 sm:$0xff]  }
  0x3b   : > { %1124 = vmatpush1.bf16.msra.mxu1 %v4203_v27  ;;  %1084 = vmatprep.subr.bf16.mxu0 %v4204_v28  ;;  %v4289_v25 = vld [vmem:[%s4703_s0 + $0x28] sm:$0xff]   ;;  %v4290_v26 = vld [vmem:[%s4703_s0 + $0x60] sm:$0xff]   ;;  %v4272_v28 = vld [vmem:[%s4677_s17 + $0x34] ss:$8 sps:$4 sm:$0xff]  }
  0x3c   : > { %1125 = vmatprep.subr.bf16.mxu1 %v4206_v29  ;;  %v4267_v27 = vld [vmem:[%s4677_s17 + $0x40] ss:$8 sps:$4 sm:$0xff]  }
  0x3d   : > { %v4291_v29 = vld [vmem:[%s4703_s0 + $0x20] sm:$0xff]   ;;  %v4283_v40 = vld [vmem:[%s4694_s21 + $0x8] ss:$0 sps:$4 sm:$0x11]  }
  0x3e   : > { %1085 = vmatpush1.bf16.msra.mxu0 %v4208_v30  ;;  %v4292_v30 = vld [vmem:[%s4703_s0 + $0x58] sm:$0xff]   ;;  %v4282_v39 = vld [vmem:[%s4694_s21] sm:$0xff]  }
  0x3f   : > { %1126 = vmatpush1.bf16.msra.mxu1 %v4209_v31  ;;  %1086 = vmatprep.subr.bf16.mxu0 %v4210_v32  ;;  %v4270_v31 = vld [vmem:[%s4677_s17 + $0x30] ss:$8 sps:$4 sm:$0xff]   ;;  %v4275_v32 = vld [vmem:[%s4677_s17 + $0x24] ss:$8 sps:$4 sm:$0xff]  }
  0x40   : > { %1127 = vmatprep.subr.bf16.mxu1 %v4212_v33  ;;  %v4293_v33 = vld [vmem:[%s4703_s0 + $0x18] sm:$0xff]  }
  0x42   : > { %1087 = vmatpush2.bf16.msra.mxu0 %v4214_v34  ;;  %v4273_v34 = vld [vmem:[%s4677_s17 + $0x20] ss:$8 sps:$4 sm:$0xff]  }
  0x43   : > { %1128 = vmatpush2.bf16.msra.mxu1 %v4215_v35  ;;  %1088 = vmatprep.subr.bf16.mxu0 %v4216_v36  ;;  %v4278_v35 = vld [vmem:[%s4677_s17 + $0x14] ss:$8 sps:$4 sm:$0xff]   ;;  %v4276_v36 = vld [vmem:[%s4677_s17 + $0x10] ss:$8 sps:$4 sm:$0xff]  }
  0x44   : > { %1129 = vmatprep.subr.bf16.mxu1 %v4218_v37  ;;  %v4281_v37 = vld [vmem:[%s4677_s17 + $0x4] ss:$8 sps:$4 sm:$0xff]   ;;  %s3350_s17 = sshll.u32 %s4610_s20, 1 }
  0x45   : > { %s4763_s21 = scalar_lea.vmem %s5147_s4, %s3350_s17  ;;  %s630_s17 = scalar_lea.vmem %s5127_s8, %s4610_s20 }
  0x46   : > { %1089 = vmatpush2.bf16.msra.mxu0 %v4220_v41  ;;  %v4294_v41 = vld [vmem:[%s4703_s0 + $0x50] sm:$0xff]  }
  0x47   : > { %1130 = vmatpush2.bf16.msra.mxu1 %v4221_v42  ;;  %1090 = vmatprep.subr.bf16.mxu0 %v4222_v43  ;;  %v4295_v42 = vld [vmem:[%s4703_s0 + $0x10] sm:$0xff]   ;;  %v4296_v43 = vld [vmem:[%s4703_s0 + $0x48] sm:$0xff]  }
  0x48   : > { %1131 = vmatprep.subr.bf16.mxu1 %v4224_v44  ;;  %v4297_v44 = vld [vmem:[%s4703_s0 + $0x8] sm:$0xff]  }
  0x4a   : > { %1091 = vmatpush2.bf16.msra.mxu0 %v4226_v47  ;;  %v4299_v47 = vld [vmem:[%s4703_s0] sm:$0xff]   ;;  %s4825_s0 = scalar_lea.vmem %s5128_s9, %s4112_s24  ;;  %s5134_s24 = sshll.u32 %s4581_s29, 5 }
  0x4b   : > { %1132 = vmatpush2.bf16.msra.mxu1 %v4227_v48  ;;  %1092 = vmatprep.subr.bf16.mxu0 %v4228_v49  ;;  %v4300_v48 = vld [vmem:[%s4724_s16 + $0x78] sm:$0xff]   ;;  %v713_v49 = vsub.s32 0, %v4661_v45 }
  0x4c   : > { %1133 = vmatprep.subr.bf16.mxu1 %v4230_v50  ;;  %v709_v50 = vld [vmem:[%s4763_s21] sm:$0x3] }
  0x4d   : > { %v714_v52 = vrot.slane %v709_v50, %v713_v49 }
  0x4e   : > { %1093 = vmatpush2.bf16.msra.mxu0 %v4232_v53  ;;  %v718_v53 = vrot.slane %v709_v50, %v717_v51 }
  0x4f   : > { %1134 = vmatpush2.bf16.msra.mxu1 %v4233_v54  ;;  %1094 = vmatprep.subr.bf16.mxu0 %v4234_v56 }
  0x50   : > { %1135 = vmatprep.subr.bf16.mxu1 %v4236_v57 }
  0x52   : > { %1095 = vmatpush2.bf16.msra.mxu0 %v4238_v59 }
  0x53   : > { %1136 = vmatpush2.bf16.msra.mxu1 %v4239_v60  ;;  %1096 = vmatprep.subr.bf16.mxu0 %v4240_v62 }
  0x54   : > { %1137 = vmatprep.subr.bf16.mxu1 %v4242_v63 }
  0x56   : > { %1097 = vmatpush2.bf16.msra.mxu0 %v4244_v0 }
  0x57   : > { %1138 = vmatpush2.bf16.msra.mxu1 %v4245_v1  ;;  %1098 = vmatprep.subr.bf16.mxu0 %v4246_v2 }
  0x58   : > { %1139 = vmatprep.subr.bf16.mxu1 %v4248_v3 }
  0x5a   : > { %1099 = vmatpush2.bf16.msra.mxu0 %v4250_v4  ;;  %v4301_v4 = vld [vmem:[%s4724_s16 + $0x38] sm:$0xff]  }
  0x5b   : > { %1140 = vmatpush2.bf16.msra.mxu1 %v4251_v5  ;;  %1100 = vmatprep.subr.bf16.mxu0 %v4252_v6  ;;  %v4302_v6 = vld [vmem:[%s4724_s16 + $0x70] sm:$0xff]  }
  0x5c   : > { %1141 = vmatprep.subr.bf16.mxu1 %v4254_v7  ;;  %v4303_v7 = vld [vmem:[%s4724_s16 + $0x30] sm:$0xff]  }
  0x5e   : > { %1101 = vmatpush2.bf16.msra.mxu0 %v4256_v8  ;;  %v4304_v8 = vld [vmem:[%s4724_s16 + $0x68] sm:$0xff]  }
  0x5f   : > { %1142 = vmatpush2.bf16.msra.mxu1 %v4257_v9  ;;  %3701 = vmatprep.subr.bf16.mxu0 %v4284_v12  ;;  %v4305_v9 = vld [vmem:[%s4724_s16 + $0x28] sm:$0xff]   ;;  %v4308_v12 = vld [vmem:[%s4724_s16 + $0x58] sm:$0xff]  }
  0x60   : > { %1461 = vmatprep.subr.bf16.mxu1 %v4260_v11  ;;  %v4307_v11 = vld [vmem:[%s4724_s16 + $0x20] sm:$0xff]  }
  0x61   : > { %1103 = vmatmul.mubr.bf16.vlgmr.msra.gmra.mxu0 %v736_v10  ;;  %v4306_v10 = vld [vmem:[%s4724_s16 + $0x60] sm:$0xff]  }
  0x62   : > { %1144 = vmatmul.mubr.bf16.vlgmr.msra.gmra.mxu1 %v744_v13  ;;  %3702 = vmatpush3.bf16.msra.mxu0 %v4285_v16  ;;  %v4309_v13 = vld [vmem:[%s4724_s16 + $0x18] sm:$0xff]   ;;  %v4312_v16 = vld [vmem:[%s4724_s16 + $0x48] sm:$0xff]  }
  0x63   : > { %1462 = vmatpush1.bf16.msra.mxu1 %v4258_v14  ;;  %1493 = vmatprep.mubr.bf16.mxu1 %v4485_v21  ;;  %v4310_v14 = vld [vmem:[%s4724_s16 + $0x50] sm:$0xff]  }
  0x64   : > { %1463 = vmatprep.subr.bf16.mxu1 %v4263_v15  ;;  %3703 = vmatprep.subr.bf16.mxu0 %v4286_v17  ;;  %v4311_v15 = vld [vmem:[%s4724_s16 + $0x10] sm:$0xff]   ;;  %v1359_v17 = vld [vmem:[%s4763_s21] sm:$0x3] }
  0x66   : > { %3704 = vmatpush3.bf16.msra.mxu0 %v4287_v20  ;;  %v4313_v20 = vld [vmem:[%s4724_s16 + $0x8] sm:$0xff]  }
  0x67   : > { %1464 = vmatpush1.bf16.msra.mxu1 %v4261_v18  ;;  %3705 = vmatprep.subr.bf16.mxu0 %v4288_v22 }
  0x68   : > { %1465 = vmatprep.subr.bf16.mxu1 %v4266_v19  ;;  %v1368_v19 = vrot.slane %v1359_v17, %v717_v51 }
  0x6a   : > { %3706 = vmatpush3.bf16.msra.mxu0 %v4289_v25 }
  0x6b   : > { %1466 = vmatpush1.bf16.msra.mxu1 %v4264_v23  ;;  %3707 = vmatprep.subr.bf16.mxu0 %v4290_v26  ;;  %v4314_v23 = vld [vmem:[%s4724_s16 + $0x40] sm:$0xff]  }
  0x6c   : > { %1467 = vmatprep.subr.bf16.mxu1 %v4269_v24 }
  0x6e   : > { %3708 = vmatpush3.bf16.msra.mxu0 %v4291_v29 }
  0x6f   : > { %1468 = vmatpush1.bf16.msra.mxu1 %v4267_v27  ;;  %3709 = vmatprep.subr.bf16.mxu0 %v4292_v30  ;;  %v4315_v27 = vld [vmem:[%s4724_s16] sm:$0xff]   ;;  %s622_s16 = scalar_lea.vmem %s5125_s6, %s4610_s20 }
  0x70   : > { %1469 = vmatprep.subr.bf16.mxu1 %v4272_v28  ;;  %v3421_v50 = vld [vmem:[%s622_s16] ss:$0 sm:$0xff]  ;;  %s5133_s16 = sshll.u32 %s4862_s30, 1 }
  0x71   : > { %s4868_s15 = scalar_lea.vmem [#allocation2], %s5133_s16 }
  0x72   : > { %3710 = vmatpush3.bf16.msra.mxu0 %v4293_v33 }
  0x73   : > { %1470 = vmatpush1.bf16.msra.mxu1 %v4270_v31  ;;  %3711 = vmatprep.subr.bf16.mxu0 %v4294_v41 }
  0x74   : > { %1471 = vmatprep.subr.bf16.mxu1 %v4275_v32 }
  0x76   : > { %3712 = vmatpush3.bf16.msra.mxu0 %v4295_v42 }
  0x77   : > { %1472 = vmatpush1.bf16.msra.mxu1 %v4273_v34  ;;  %3713 = vmatprep.subr.bf16.mxu0 %v4296_v43 }
  0x78   : > { %1473 = vmatprep.subr.bf16.mxu1 %v4278_v35 }
  0x7a   : > { %3714 = vmatpush3.bf16.msra.mxu0 %v4297_v44 }
  0x7b   : > { %1474 = vmatpush1.bf16.msra.mxu1 %v4276_v36  ;;  %3715 = vmatprep.subr.bf16.mxu0 %v4298_v46 }
  0x7c   : > { %1475 = vmatprep.subr.bf16.mxu1 %v4281_v37 }
  0x7e   : > { %3716 = vmatpush3.bf16.msra.mxu0 %v4299_v47 }
  0x7f   : > { %1476 = vmatpush1.bf16.msra.mxu1 %v4279_v38  ;;  %3723 = vmatprep.subr.bf16.mxu0 %v4300_v48  ;;  %v4486_v48 = vmov 0.0  }
  0x80   : > { %3859 = vmatprep.subr.bf16.mxu1 %v4486_v48 }
  0x82   : > { %1494 = vmatmul.mubr.bf16.vlgmr.msra.gmra.mxu1 %v4282_v39 }
  0x83   : > { %1503 = vmatprep.mubr.bf16.mxu1 %v4485_v21  ;;  %v1364_v21 = vrot.slane %v1359_v17, %v713_v49 }
  0x8a   : > { %1504 = vmatmul.mubr.bf16.gmra.mxu1 %v4283_v40 }
  0x8b   : > { %3863 = vmatprep.mubr.msk.bf16.mxu1 %vm4487_vm0, %v4486_v48 }
 0x121   : > { %v1104_v54 = vpop.f32.mrf.mxu0 }
 0x122   : > { %v1145_v55 = vpop.f32.mrf.mxu1  ;;  %v1105_v56 = vadd.f32 %v1104_v54, %v714_v52 }
 0x123   : > { %v1106_v57 = vpop.f32.mrf.mxu0 }
 0x124   : > { %v1147_v58 = vpop.f32.mrf.mxu1  ;;  %v1146_v59 = vadd.f32 %v1145_v55, %v1105_v56  ;;  %v1107_v60 = vadd.f32 %v1106_v57, %v718_v53 }
 0x125   : > { %v1108_v61 = vpop.f32.mrf.mxu0 }
 0x126   : > { %v1149_v62 = vpop.f32.mrf.mxu1  ;;  %v1148_v63 = vadd.f32 %v1147_v58, %v1107_v60  ;;  %v1152_v0 = vmax.f32 %v1146_v59, 0.0  ;;  %v4316_v58 = vld [vmem:[%s4741_s23 + $0x38] sm:$0xff]   ;;  %v4318_v59 = vld [vmem:[%s4741_s23 + $0x30] sm:$0xff]   ;;  %v4320_v60 = vld [vmem:[%s4741_s23 + $0x28] sm:$0xff]  }
 0x127   : > { %v1109_v1 = vpop.f32.mrf.mxu0  ;;  %v4322_v61 = vld [vmem:[%s4741_s23 + $0x20] sm:$0xff]  }
 0x128   : > { %v1150_v45 = vpop.f32.mrf.mxu1  ;;  %v1153_v2 = vmax.f32 %v1148_v63, 0.0  ;;  %v1154_v5 = vpack.c.bf16 %v1152_v0, %v1152_v0  ;;  %v4324_v0 = vld [vmem:[%s4741_s23 + $0x18] sm:$0xff]  }
 0x12a   : > { %v1155_v3 = vpack.c.bf16 %v1153_v2, %v1153_v2  ;;  %v4326_v2 = vld [vmem:[%s4741_s23 + $0x10] sm:$0xff]  }
 0x12c   : > { %1323 = vmatprep.mubr.bf16.mxu0 %v1155_v3 }
 0x12d   : > { %1324 = vmatmul.mubr.bf16.vlgmr.msra.gmra.mxu0 %v1154_v5  ;;  %v4328_v5 = vld [vmem:[%s4741_s23 + $0x8] sm:$0xff]  }
 0x12e   : > { %3724 = vmatpush3.bf16.msra.mxu0 %v4301_v4 }
 0x12f   : > { %3725 = vmatprep.subr.bf16.mxu0 %v4302_v6 }
 0x132   : > { %3726 = vmatpush3.bf16.msra.mxu0 %v4303_v7  ;;  %v3456_v7 = vld [vmem:[%s630_s17] ss:$0 sm:$0xff]  ;;  %s642_s17 = scalar_lea.vmem %s5130_s11, %s4610_s20  ;;  %s3093_s20 = scalar_lea.sflag [#allocation3], %s4862_s30 }
 0x133   : > { %3727 = vmatprep.subr.bf16.mxu0 %v4304_v8 }
 0x136   : > { %3728 = vmatpush3.bf16.msra.mxu0 %v4305_v9 }
 0x137   : > { %3729 = vmatprep.subr.bf16.mxu0 %v4306_v10 }
 0x13a   : > { %3730 = vmatpush3.bf16.msra.mxu0 %v4307_v11 }
 0x13b   : > { %3731 = vmatprep.subr.bf16.mxu0 %v4308_v12 }
 0x13e   : > { %3732 = vmatpush3.bf16.msra.mxu0 %v4309_v13 }
 0x13f   : > { %3733 = vmatprep.subr.bf16.mxu0 %v4310_v14 }
 0x142   : > { %v1495_v18 = vpop.f32.mrf.mxu1  ;;  %3734 = vmatpush3.bf16.msra.mxu0 %v4311_v15 }
 0x143   : > { %3735 = vmatprep.subr.bf16.mxu0 %v4312_v16  ;;  %v1496_v28 = vadd.f32 %v1495_v18, %v1364_v21  ;;  %v1707_v18 = vld [vmem:[%s4825_s0] sm:$0x1] }
 0x144   : > { %v1497_v22 = vpop.f32.mrf.mxu1 }
 0x145   : > { %v1498_v25 = vadd.f32 %v1497_v22, %v1368_v19  ;;  %v1512_v35 = vmax.f32 %v1496_v28, 0.0  ;;  %v4321_v22 = vld [vmem:[%s4741_s23 + $0x68] sm:$0xff]   ;;  %v4331_v28 = vld [vmem:[%s4741_s23 + $0x40] sm:$0xff]  }
 0x146   : > { %v1499_v24 = vpop.f32.mrf.mxu1  ;;  %3736 = vmatpush3.bf16.msra.mxu0 %v4313_v20  ;;  %v4317_v20 = vld [vmem:[%s4741_s23 + $0x78] sm:$0xff]  }
 0x147   : > { %v1500_v26 = vadd.f32 %v1499_v24, %v1364_v21  ;;  %3737 = vmatprep.subr.bf16.mxu0 %v4314_v23  ;;  %v1513_v33 = vmax.f32 %v1498_v25, 0.0  ;;  %v4323_v23 = vld [vmem:[%s4741_s23 + $0x60] sm:$0xff]   ;;  %v4325_v24 = vld [vmem:[%s4741_s23 + $0x58] sm:$0xff]   ;;  %v4327_v25 = vld [vmem:[%s4741_s23 + $0x50] sm:$0xff]  }
 0x148   : > { %v1501_v29 = vpop.f32.mrf.mxu1 }
 0x149   : > { %v1502_v30 = vadd.f32 %v1501_v29, %v1368_v19  ;;  %v1514_v31 = vmax.f32 %v1500_v26, 0.0  ;;  %v4330_v26 = vld [vmem:[%s4741_s23] sm:$0xff]  }
 0x14a   : > { %v1505_v32 = vpop.f32.mrf.mxu1  ;;  %3738 = vmatpush3.bf16.msra.mxu0 %v4315_v27  ;;  %v4329_v27 = vld [vmem:[%s4741_s23 + $0x48] sm:$0xff]  }
 0x14b   : > { %v1515_v34 = vmax.f32 %v1502_v30, 0.0  ;;  %v1518_v39 = vpack.c.bf16 %v1514_v31, %v1512_v35  ;;  %v1506_v40 = vadd.f32 %v1505_v32, %v1364_v21  ;;  %3895 = vmatprep.subr.bf16.mxu0 %v4486_v48  ;;  %v4319_v21 = vld [vmem:[%s4741_s23 + $0x70] sm:$0xff]  }
 0x14c   : > { %v1507_v36 = vpop.f32.mrf.mxu1 }
 0x14d   : > { %v1519_v37 = vpack.c.bf16 %v1515_v34, %v1513_v33  ;;  %v1508_v38 = vadd.f32 %v1507_v36, %v1368_v19  ;;  %v1516_v46 = vmax.f32 %v1506_v40, 0.0  ;;  %v3474_v19 = vld [vmem:[%s4825_s0 + $0x1] sm:$0x1]  ;;  %v4332_v34 = vld [vmem:[%s4741_s23 + $0xb8] sm:$0xff]  }
 0x14e   : > { %v1509_v41 = vpop.f32.mrf.mxu1 }
 0x14f   : > { %v1517_v42 = vmax.f32 %v1508_v38, 0.0  ;;  %1689 = vmatprep.mubr.bf16.mxu0 %v1519_v37  ;;  %v1520_v47 = vpack.c.bf16 %v1516_v46, %v1516_v46  ;;  %v4333_v38 = vld [vmem:[%s4741_s23 + $0xb0] sm:$0xff]   ;;  %v4337_v46 = vld [vmem:[%s4741_s23 + $0xa0] sm:$0xff]  }
 0x150   : > { %v1510_v43 = vpop.f32.mrf.mxu1  ;;  %1690 = vmatmul.mubr.bf16.vlgmr.msra.gmra.mxu0 %v1518_v39 }
 0x151   : > { %v1521_v44 = vpack.c.bf16 %v1517_v42, %v1517_v42  ;;  %3896 = vmatpush3.bf16.msra.mxu0 %v4316_v58  ;;  %v4335_v42 = vld [vmem:[%s4741_s23 + $0xa8] sm:$0xff]  }
 0x152   : > { %3897 = vmatprep.subr.bf16.mxu0 %v4486_v48  ;;  %v4343_v58 = vld [vmem:[%s4741_s23 + $0x88] sm:$0xff]  }
 0x153   : > { %1697 = vmatprep.mubr.bf16.mxu0 %v1521_v44 }
 0x155   : > { %3898 = vmatpush3.bf16.msra.mxu0 %v4318_v59  ;;  %v4344_v59 = vld [vmem:[%s4741_s23 + $0xd0] sm:$0xff]  }
 0x156   : > { %3899 = vmatprep.subr.bf16.mxu0 %v4486_v48 }
 0x158   : > { %1698 = vmatmul.mubr.bf16.gmra.mxu0 %v1520_v47 }
 0x159   : > { %3911 = vmatprep.mubr.msk.bf16.mxu0 %vm4487_vm0, %v4486_v48  ;;  %3900 = vmatpush3.bf16.msra.mxu0 %v4320_v60  ;;  %v4345_v60 = vld [vmem:[%s4741_s23 + $0x80] sm:$0xff]  }
 0x15a   : > { %3901 = vmatprep.subr.bf16.mxu0 %v4486_v48 }
 0x15d   : > { %3902 = vmatpush3.bf16.msra.mxu0 %v4322_v61  ;;  %v4346_v61 = vld [vmem:[%s4741_s23 + $0xc8] sm:$0xff]  }
 0x15e   : > { %3903 = vmatprep.subr.bf16.mxu0 %v4486_v48 }
 0x161   : > { %3904 = vmatpush3.bf16.msra.mxu0 %v4324_v0 }
 0x162   : > { %3905 = vmatprep.subr.bf16.mxu0 %v4486_v48 }
 0x165   : > { %3906 = vmatpush3.bf16.msra.mxu0 %v4326_v2 }
 0x166   : > { %3907 = vmatprep.subr.bf16.mxu0 %v4486_v48 }
 0x169   : > { %3908 = vmatpush3.bf16.msra.mxu0 %v4328_v5 }
 0x16a   : > { %3909 = vmatprep.subr.bf16.mxu0 %v4486_v48 }
 0x16d   : > { %3910 = vmatpush3.bf16.msra.mxu0 %v4330_v26  ;;  %v4353_v26 = vld [vmem:[%s4741_s23 + $0x120] sm:$0xff]  }
 0x16e   : > { %3923 = vmatprep.subr.bf16.mxu0 %v4486_v48 }
 0x1ed   : > { %v3717_v49 = vpop.f32.mrf.mxu0 }
 0x1ef   : > { %v3718_v51 = vpop.f32.mrf.mxu0 }
 0x1f0   : > { %v3719_v52 = vadd.f32 %v3718_v51, %v3717_v49  ;;  %v3508_v49 = vld [vmem:[%s4825_s0 + $0x2] sm:$0x1]  ;;  %v4334_v51 = vld [vmem:[%s4741_s23 + $0xf8] sm:$0xff]  }
 0x1f1   : > { %v3720_v53 = vpop.f32.mrf.mxu0 }
 0x1f2   : > { %v4794_v54 = vadd.f32 %v3719_v52, %v3421_v50  ;;  %v3534_v50 = vld [vmem:[%s4825_s0 + $0x3] sm:$0x1]  ;;  %v4336_v52 = vld [vmem:[%s4741_s23 + $0xf0] sm:$0xff]   ;;  %v4338_v53 = vld [vmem:[%s4741_s23 + $0xe8] sm:$0xff]  }
 0x1f3   : > { %v3721_v55 = vpop.f32.mrf.mxu0 }
 0x1f4   : > { %v1331_v56 = vmul.f32 %v4794_v54, %v4794_v54  ;;  %v4340_v55 = vld [vmem:[%s4741_s23 + $0xe0] sm:$0xff]  }
 0x1f6   : > { %v1333_v57 = vsel %vm1332_vm1, %v1331_v56, 0.0  ;;  %v4341_v56 = vld [vmem:[%s4741_s23 + $0x90] sm:$0xff]  }
 0x1f7   : > { %1334 = vadd.xlane.f32.xlu0 %v1333_v57  ;;  %v4342_v57 = vld [vmem:[%s4741_s23 + $0xd8] sm:$0xff]  }
 0x210   : > { %v3739_v62 = vpop.f32.mrf.mxu0 }
 0x212   : > { %v3740_v63 = vpop.f32.mrf.mxu0 }
 0x213   : > { %v3741_v11 = vadd.f32 %v3740_v63, %v3739_v62  ;;  %v4347_v62 = vld [vmem:[%s4741_s23 + $0xc0] sm:$0xff]  }
 0x214   : > { %v3742_v1 = vpop.f32.mrf.mxu0 }
 0x215   : > { %v1692_v16 = vadd.f32 %v3741_v11, %v3456_v7 }
 0x216   : > { %v3743_v45 = vpop.f32.mrf.mxu0 }
 0x217   : > { %v3744_v8 = vadd.f32 %v3743_v45, %v3742_v1 }
 0x218   : > { %v3745_v3 = vpop.f32.mrf.mxu0 }
 0x219   : > { %v1695_v14 = vadd.f32 %v3744_v8, %v3456_v7  ;;  %v4348_v8 = vld [vmem:[%s4741_s23 + $0x138] sm:$0xff]  }
 0x21a   : > { %v3746_v4 = vpop.f32.mrf.mxu0 }
 0x21b   : > { %v3747_v6 = vadd.f32 %v3746_v4, %v3745_v3  ;;  %v4827_v17 = vpack.c.bf16 %v1695_v14, %v1692_v16 }
 0x21c   : > { %v3748_v9 = vpop.f32.mrf.mxu0 }
 0x21d   : > { %v1700_v10 = vadd.f32 %v3747_v6, %v3456_v7 }
 0x21e   : > { %v3749_v12 = vpop.f32.mrf.mxu0 }
 0x21f   : > { %v1706_v13 = vpack.c.bf16 %v1700_v10, %v1700_v10  ;;  %v4349_v12 = vld [vmem:[%s4741_s23 + $0x130] sm:$0xff]  }
 0x221   : > { %v4818_v15 = vsel %vm1712_vm2, %v1706_v13, 0 }
 0x222   : > { %3860 = vmatpush3.bf16.msra.mxu1 %v4818_v15 }
 0x223   : > { %3861 = vmatprep.subr.bf16.mxu1 %v4486_v48 }
 0x226   : > { %3862 = vmatpush3.bf16.msra.mxu1 %v4827_v17 }
 0x227   : > { %3867 = vmatprep.subr.bf16.mxu1 %v4486_v48 }
 0x229   : > { %3864 = vmatmul.mubr.msk.bf16.vlgmr.msra.gmra.mxu1 %vm1708_vm3, %v1707_v18  ;;  %v4351_v18 = vld [vmem:[%s4741_s23 + $0x128] sm:$0xff]  }
 0x22a   : > { %3868 = vmatpush3.bf16.msra.mxu1 %v4818_v15  ;;  %3871 = vmatprep.mubr.msk.bf16.mxu1 %vm4487_vm0, %v4486_v48 }
 0x22b   : > { %3869 = vmatprep.subr.bf16.mxu1 %v4486_v48 }
 0x22e   : > { %3870 = vmatpush3.bf16.msra.mxu1 %v4827_v17 }
 0x22f   : > { %3875 = vmatprep.subr.bf16.mxu1 %v4486_v48 }
 0x231   : > { %3872 = vmatmul.mubr.msk.bf16.vlgmr.msra.gmra.mxu1 %vm1708_vm3, %v3474_v19 }
 0x232   : > { %3876 = vmatpush3.bf16.msra.mxu1 %v4317_v20  ;;  %3891 = vmatprep.mubr.msk.bf16.mxu1 %vm4487_vm0, %v4486_v48 }
 0x233   : > { %3877 = vmatprep.subr.bf16.mxu1 %v4486_v48 }
 0x236   : > { %3878 = vmatpush3.bf16.msra.mxu1 %v4319_v21 }
 0x237   : > { %3879 = vmatprep.subr.bf16.mxu1 %v4486_v48 }
 0x23a   : > { %3880 = vmatpush3.bf16.msra.mxu1 %v4321_v22  ;;  %v3560_v22 = vld [vmem:[%s4825_s0 + $0x4] sm:$0x1] }
 0x23b   : > { %3881 = vmatprep.subr.bf16.mxu1 %v4486_v48 }
 0x23e   : > { %3882 = vmatpush3.bf16.msra.mxu1 %v4323_v23  ;;  %v3586_v23 = vld [vmem:[%s4825_s0 + $0x5] sm:$0x1] }
 0x23f   : > { %3883 = vmatprep.subr.bf16.mxu1 %v4486_v48 }
 0x242   : > { %3884 = vmatpush3.bf16.msra.mxu1 %v4325_v24  ;;  %v4350_v24 = vld [vmem:[%s4741_s23 + $0x178] sm:$0xff]  }
 0x243   : > { %3885 = vmatprep.subr.bf16.mxu1 %v4486_v48 }
 0x246   : > { %3886 = vmatpush3.bf16.msra.mxu1 %v4327_v25  ;;  %v4352_v25 = vld [vmem:[%s4741_s23 + $0x170] sm:$0xff]  }
 0x247   : > { %3887 = vmatprep.subr.bf16.mxu1 %v4486_v48 }
 0x24a   : > { %3888 = vmatpush3.bf16.msra.mxu1 %v4329_v27  ;;  %v4354_v27 = vld [vmem:[%s4741_s23 + $0x168] sm:$0xff]  }
 0x24b   : > { %3889 = vmatprep.subr.bf16.mxu1 %v4486_v48 }
 0x24e   : > { %3890 = vmatpush3.bf16.msra.mxu1 %v4331_v28  ;;  %v4355_v28 = vld [vmem:[%s4741_s23 + $0x118] sm:$0xff]  }
 0x24f   : > { %3915 = vmatprep.subr.bf16.mxu1 %v4486_v48 }
 0x280   : > { %v1335_v29 = vpop.xlane.xlu0 %1334 }
 0x281   : > { %v1336_v30 = vmax.f32 %v1335_v29, 1e-24  ;;  %v4356_v29 = vld [vmem:[%s4741_s23 + $0x160] sm:$0xff]  }
 0x283   : > { %4388 = vrsqrt.f32 %v1336_v30  ;;  %v4357_v30 = vld [vmem:[%s4741_s23 + $0x110] sm:$0xff]  }
 0x290   : > { %v4389_v31 = vpop.eup %4388 }
 0x291   : > { %v1338_v32 = vmul.f32 %v4389_v31, %v4794_v54  ;;  %v4339_v54 = vld [vmem:[%s4741_s23 + $0x98] sm:$0xff]  }
 0x292   : > { %v4358_v31 = vld [vmem:[%s4741_s23 + $0x158] sm:$0xff]  }
 0x293   : > { %1339 = vst [vmem:[%s4868_s15] sm:$0x3] %v1338_v32  ;;  %v4359_v32 = vld [vmem:[%s4741_s23 + $0x108] sm:$0xff]  }
 0x2e9   : > { %v1750_v33 = vpop.f32.mrf.mxu1 }
 0x2ea   : > { %v1756_v35 = vpack.c.bf16 %v1750_v33, %v1750_v33  ;;  %v4360_v33 = vld [vmem:[%s4741_s23 + $0x150] sm:$0xff]  }
 0x2eb   : > { %v3865_v36 = vpop.f32.mrf.mxu1 }
 0x2ec   : > { %3912 = vmatmul.mubr.bf16.vlgmr.msra.gmra.mxu0 %v1756_v35  ;;  %v4362_v35 = vld [vmem:[%s4741_s23 + $0x148] sm:$0xff]   ;;  %v4363_v36 = vld [vmem:[%s4741_s23 + $0x140] sm:$0xff]  }
 0x2ed   : > { %v1753_v37 = vpop.f32.mrf.mxu1  ;;  %3924 = vmatpush3.bf16.msra.mxu0 %v4332_v34  ;;  %3939 = vmatprep.mubr.msk.bf16.mxu0 %vm4487_vm0, %v4486_v48  ;;  %v4361_v34 = vld [vmem:[%s4741_s23 + $0x100] sm:$0xff]  }
 0x2ee   : > { %3925 = vmatprep.subr.bf16.mxu0 %v4486_v48 }
 0x2ef   : > { %v3866_v39 = vpop.f32.mrf.mxu1 }
 0x2f1   : > { %v1812_v40 = vpop.f32.mrf.mxu1  ;;  %3926 = vmatpush3.bf16.msra.mxu0 %v4333_v38 }
 0x2f2   : > { %v1818_v41 = vpack.c.bf16 %v1812_v40, %v1812_v40  ;;  %3927 = vmatprep.subr.bf16.mxu0 %v4486_v48 }
 0x2f3   : > { %v3873_v43 = vpop.f32.mrf.mxu1 }
 0x2f4   : > { %3892 = vmatmul.mubr.bf16.vlgmr.msra.gmra.mxu1 %v1818_v41 }
 0x2f5   : > { %3916 = vmatpush3.bf16.msra.mxu1 %v4818_v15  ;;  %v1815_v44 = vpop.f32.mrf.mxu1  ;;  %3919 = vmatprep.mubr.msk.bf16.mxu1 %vm4487_vm0, %v4486_v48 }
 0x2f6   : > { %3917 = vmatprep.subr.bf16.mxu1 %v4486_v48  ;;  %3928 = vmatpush3.bf16.msra.mxu0 %v4335_v42 }
 0x2f7   : > { %v3874_v47 = vpop.f32.mrf.mxu1  ;;  %3929 = vmatprep.subr.bf16.mxu0 %v4486_v48 }
 0x2f9   : > { %3918 = vmatpush3.bf16.msra.mxu1 %v4827_v17 }
 0x2fa   : > { %3943 = vmatprep.subr.bf16.mxu1 %v4486_v48  ;;  %3930 = vmatpush3.bf16.msra.mxu0 %v4337_v46 }
 0x2fb   : > { %3931 = vmatprep.subr.bf16.mxu0 %v4486_v48 }
 0x2fc   : > { %3920 = vmatmul.mubr.msk.bf16.vlgmr.msra.gmra.mxu1 %vm1708_vm3, %v3508_v49 }
 0x2fd   : > { %3944 = vmatpush3.bf16.msra.mxu1 %v4818_v15  ;;  %3947 = vmatprep.mubr.msk.bf16.mxu1 %vm4487_vm0, %v4486_v48 }
 0x2fe   : > { %3945 = vmatprep.subr.bf16.mxu1 %v4486_v48  ;;  %3932 = vmatpush3.bf16.msra.mxu0 %v4339_v54  ;;  %v4365_v54 = vld [vmem:[%s4741_s23 + $0x1b0] sm:$0xff]  }
 0x2ff   : > { %3933 = vmatprep.subr.bf16.mxu0 %v4486_v48 }
 0x301   : > { %3946 = vmatpush3.bf16.msra.mxu1 %v4827_v17 }
 0x302   : > { %3951 = vmatprep.subr.bf16.mxu1 %v4486_v48  ;;  %3934 = vmatpush3.bf16.msra.mxu0 %v4341_v56 }
 0x303   : > { %3935 = vmatprep.subr.bf16.mxu0 %v4486_v48 }
 0x304   : > { %3948 = vmatmul.mubr.msk.bf16.vlgmr.msra.gmra.mxu1 %vm1708_vm3, %v3534_v50  ;;  %v4364_v50 = vld [vmem:[%s4741_s23 + $0x1b8] sm:$0xff]  }
 0x305   : > { %3952 = vmatpush3.bf16.msra.mxu1 %v4334_v51  ;;  %3967 = vmatprep.mubr.msk.bf16.mxu1 %vm4487_vm0, %v4486_v48 }
 0x306   : > { %3953 = vmatprep.subr.bf16.mxu1 %v4486_v48  ;;  %3936 = vmatpush3.bf16.msra.mxu0 %v4343_v58  ;;  %v4366_v58 = vld [vmem:[%s4741_s23 + $0x1a8] sm:$0xff]  }
 0x307   : > { %3937 = vmatprep.subr.bf16.mxu0 %v4486_v48 }
 0x309   : > { %3954 = vmatpush3.bf16.msra.mxu1 %v4336_v52 }
 0x30a   : > { %3955 = vmatprep.subr.bf16.mxu1 %v4486_v48  ;;  %3938 = vmatpush3.bf16.msra.mxu0 %v4345_v60 }
 0x30b   : > { %3979 = vmatprep.subr.bf16.mxu0 %v4486_v48 }
 0x30d   : > { %3956 = vmatpush3.bf16.msra.mxu1 %v4338_v53 }
 0x30e   : > { %3957 = vmatprep.subr.bf16.mxu1 %v4486_v48 }
 0x311   : > { %3958 = vmatpush3.bf16.msra.mxu1 %v4340_v55 }
 0x312   : > { %3959 = vmatprep.subr.bf16.mxu1 %v4486_v48 }
 0x315   : > { %3960 = vmatpush3.bf16.msra.mxu1 %v4342_v57 }
 0x316   : > { %3961 = vmatprep.subr.bf16.mxu1 %v4486_v48 }
 0x319   : > { %3962 = vmatpush3.bf16.msra.mxu1 %v4344_v59 }
 0x31a   : > { %3963 = vmatprep.subr.bf16.mxu1 %v4486_v48 }
 0x31d   : > { %3964 = vmatpush3.bf16.msra.mxu1 %v4346_v61  ;;  %v4368_v61 = vld [vmem:[%s4741_s23 + $0x1a0] sm:$0xff]  }
 0x31e   : > { %3965 = vmatprep.subr.bf16.mxu1 %v4486_v48 }
 0x321   : > { %3966 = vmatpush3.bf16.msra.mxu1 %v4347_v62 }
 0x322   : > { %3971 = vmatprep.subr.bf16.mxu1 %v4486_v48 }
 0x3ac   : > { %v2006_v63 = vpop.f32.mrf.mxu0 }
 0x3ae   : > { %v3913_v0 = vpop.f32.mrf.mxu0 }
 0x3af   : > { %v3638_v0 = vld [vmem:[%s4825_s0 + $0x7] sm:$0x1] }
 0x3b0   : > { %v2009_v1 = vpop.f32.mrf.mxu0 }
 0x3b1   : > { %v4367_v1 = vld [vmem:[%s4741_s23 + $0x1f8] sm:$0xff]  }
 0x3b2   : > { %v3914_v45 = vpop.f32.mrf.mxu0 }
 0x3b3   : > { %v4369_v45 = vld [vmem:[%s4741_s23 + $0x1f0] sm:$0xff]  }
 0x3b4   : > { %v1918_v2 = vpop.f32.mrf.mxu1 }
 0x3b5   : > { %v4923_v3 = vadd.f32 %v2006_v63, %v1918_v2  ;;  %v3612_v63 = vld [vmem:[%s4825_s0 + $0x6] sm:$0x1]  ;;  %v4370_v2 = vld [vmem:[%s4741_s23 + $0x198] sm:$0xff]  }
 0x3b6   : > { %v3893_v4 = vpop.f32.mrf.mxu1 }
 0x3b7   : > { %v4372_v4 = vld [vmem:[%s4741_s23 + $0x190] sm:$0xff]  }
 0x3b8   : > { %v1921_v5 = vpop.f32.mrf.mxu1 }
 0x3b9   : > { %v4373_v5 = vld [vmem:[%s4741_s23 + $0x1e0] sm:$0xff]  }
 0x3ba   : > { %v3894_v6 = vpop.f32.mrf.mxu1 }
 0x3bb   : > { %v4374_v6 = vld [vmem:[%s4741_s23 + $0x188] sm:$0xff]  }
 0x3bc   : > { %v2051_v7 = vpop.f32.mrf.mxu1 }
 0x3bd   : > { %v2057_v9 = vpack.c.bf16 %v2051_v7, %v2051_v7  ;;  %v4375_v7 = vld [vmem:[%s4741_s23 + $0x1d8] sm:$0xff]  }
 0x3be   : > { %v3921_v10 = vpop.f32.mrf.mxu1 }
 0x3bf   : > { %3940 = vmatmul.mubr.bf16.vlgmr.msra.gmra.mxu0 %v2057_v9  ;;  %v4377_v9 = vld [vmem:[%s4741_s23 + $0x1d0] sm:$0xff]   ;;  %v4378_v10 = vld [vmem:[%s4741_s23 + $0x1c8] sm:$0xff]  }
 0x3c0   : > { %v2054_v11 = vpop.f32.mrf.mxu1  ;;  %3980 = vmatpush3.bf16.msra.mxu0 %v4348_v8  ;;  %3995 = vmatprep.mubr.msk.bf16.mxu0 %vm4487_vm0, %v4486_v48  ;;  %v4376_v8 = vld [vmem:[%s4741_s23 + $0x180] sm:$0xff]  }
 0x3c1   : > { %3981 = vmatprep.subr.bf16.mxu0 %v4486_v48  ;;  %v4379_v11 = vld [vmem:[%s4741_s23 + $0x1c0] sm:$0xff]  }
 0x3c2   : > { %v3922_v13 = vpop.f32.mrf.mxu1 }
 0x3c4   : > { %v2203_v14 = vpop.f32.mrf.mxu1  ;;  %3982 = vmatpush3.bf16.msra.mxu0 %v4349_v12 }
 0x3c5   : > { %v2209_v16 = vpack.c.bf16 %v2203_v14, %v2203_v14  ;;  %3983 = vmatprep.subr.bf16.mxu0 %v4486_v48 }
 0x3c6   : > { %v3949_v19 = vpop.f32.mrf.mxu1 }
 0x3c7   : > { %3968 = vmatmul.mubr.bf16.vlgmr.msra.gmra.mxu1 %v2209_v16 }
 0x3c8   : > { %3972 = vmatpush3.bf16.msra.mxu1 %v4818_v15  ;;  %v2206_v20 = vpop.f32.mrf.mxu1  ;;  %3975 = vmatprep.mubr.msk.bf16.mxu1 %vm4487_vm0, %v4486_v48 }
 0x3c9   : > { %3973 = vmatprep.subr.bf16.mxu1 %v4486_v48  ;;  %3984 = vmatpush3.bf16.msra.mxu0 %v4351_v18 }
 0x3ca   : > { %v3950_v21 = vpop.f32.mrf.mxu1  ;;  %3985 = vmatprep.subr.bf16.mxu0 %v4486_v48 }
 0x3cc   : > { %3974 = vmatpush3.bf16.msra.mxu1 %v4827_v17 }
 0x3cd   : > { %3999 = vmatprep.subr.bf16.mxu1 %v4486_v48  ;;  %3986 = vmatpush3.bf16.msra.mxu0 %v4353_v26 }
 0x3ce   : > { %3987 = vmatprep.subr.bf16.mxu0 %v4486_v48 }
 0x3cf   : > { %3976 = vmatmul.mubr.msk.bf16.vlgmr.msra.gmra.mxu1 %vm1708_vm3, %v3560_v22 }
 0x3d0   : > { %4000 = vmatpush3.bf16.msra.mxu1 %v4818_v15  ;;  %4003 = vmatprep.mubr.msk.bf16.mxu1 %vm4487_vm0, %v4486_v48 }
 0x3d1   : > { %4001 = vmatprep.subr.bf16.mxu1 %v4486_v48  ;;  %3988 = vmatpush3.bf16.msra.mxu0 %v4355_v28 }
 0x3d2   : > { %3989 = vmatprep.subr.bf16.mxu0 %v4486_v48 }
 0x3d4   : > { %4002 = vmatpush3.bf16.msra.mxu1 %v4827_v17 }
 0x3d5   : > { %4007 = vmatprep.subr.bf16.mxu1 %v4486_v48  ;;  %3990 = vmatpush3.bf16.msra.mxu0 %v4357_v30  ;;  %v3664_v30 = vld [vmem:[%s4825_s0 + $0x8] sm:$0x1]  ;;  %s3109_s0 = scalar_lea.hbm %s5131_s12, %s5134_s24 }
 0x3d6   : > { %3991 = vmatprep.subr.bf16.mxu0 %v4486_v48 }
 0x3d7   : > { %4004 = vmatmul.mubr.msk.bf16.vlgmr.msra.gmra.mxu1 %vm1708_vm3, %v3586_v23 }
 0x3d8   : > { %4008 = vmatpush3.bf16.msra.mxu1 %v4350_v24  ;;  %4023 = vmatprep.mubr.msk.bf16.mxu1 %vm4487_vm0, %v4486_v48 }
 0x3d9   : > { %4009 = vmatprep.subr.bf16.mxu1 %v4486_v48  ;;  %3992 = vmatpush3.bf16.msra.mxu0 %v4359_v32 }
 0x3da   : > { %3993 = vmatprep.subr.bf16.mxu0 %v4486_v48 }
 0x3dc   : > { %4010 = vmatpush3.bf16.msra.mxu1 %v4352_v25 }
 0x3dd   : > { %4011 = vmatprep.subr.bf16.mxu1 %v4486_v48  ;;  %3994 = vmatpush3.bf16.msra.mxu0 %v4361_v34 }
 0x3de   : > { %4035 = vmatprep.subr.bf16.mxu0 %v4486_v48 }
 0x3e0   : > { %4012 = vmatpush3.bf16.msra.mxu1 %v4354_v27 }
 0x3e1   : > { %4013 = vmatprep.subr.bf16.mxu1 %v4486_v48 }
 0x3e4   : > { %4014 = vmatpush3.bf16.msra.mxu1 %v4356_v29 }
 0x3e5   : > { %4015 = vmatprep.subr.bf16.mxu1 %v4486_v48 }
 0x3e8   : > { %4016 = vmatpush3.bf16.msra.mxu1 %v4358_v31  ;;  %v4380_v31 = vld [vmem:[%s4741_s23 + $0x238] sm:$0xff]  }
 0x3e9   : > { %4017 = vmatprep.subr.bf16.mxu1 %v4486_v48 }
 0x3ec   : > { %4018 = vmatpush3.bf16.msra.mxu1 %v4360_v33 }
 0x3ed   : > { %4019 = vmatprep.subr.bf16.mxu1 %v4486_v48 }
 0x3f0   : > { %4020 = vmatpush3.bf16.msra.mxu1 %v4362_v35  ;;  %v4382_v35 = vld [vmem:[%s4741_s23 + $0x228] sm:$0xff]  }
 0x3f1   : > { %4021 = vmatprep.subr.bf16.mxu1 %v4486_v48 }
 0x3f4   : > { %4022 = vmatpush3.bf16.msra.mxu1 %v4363_v36  ;;  %v4383_v36 = vld [vmem:[%s4741_s23 + $0x220] sm:$0xff]  }
 0x3f5   : > { %4027 = vmatprep.subr.bf16.mxu1 %v4486_v48 }
 0x47f   : > { %v2157_v37 = vpop.f32.mrf.mxu0 }
 0x480   : > { %v2163_v38 = vadd.f32 %v2157_v37, %v4923_v3  ;;  %v4371_v3 = vld [vmem:[%s4741_s23 + $0x1e8] sm:$0xff]   ;;  %v4384_v37 = vld [vmem:[%s4741_s23 + $0x218] sm:$0xff]  }
 0x481   : > { %v3941_v39 = vpop.f32.mrf.mxu0 }
 0x482   : > { %v4386_v39 = vld [vmem:[%s4741_s23 + $0x208] sm:$0xff]  }
 0x483   : > { %v2160_v40 = vpop.f32.mrf.mxu0 }
 0x484   : > { %v4387_v40 = vld [vmem:[%s4741_s23 + $0x200] sm:$0xff]  }
 0x485   : > { %v3942_v41 = vpop.f32.mrf.mxu0 }
 0x487   : > { %v2309_v42 = vpop.f32.mrf.mxu1 }
 0x488   : > { %v4978_v43 = vadd.f32 %v2309_v42, %v2163_v38  ;;  %v4385_v38 = vld [vmem:[%s4741_s23 + $0x210] sm:$0xff]  }
 0x489   : > { %v3969_v44 = vpop.f32.mrf.mxu1 }
 0x48b   : > { %v2312_v46 = vpop.f32.mrf.mxu1 }
 0x48d   : > { %v3970_v47 = vpop.f32.mrf.mxu1 }
 0x48f   : > { %v2355_v49 = vpop.f32.mrf.mxu1 }
 0x490   : > { %v2361_v51 = vpack.c.bf16 %v2355_v49, %v2355_v49 }
 0x491   : > { %v3977_v52 = vpop.f32.mrf.mxu1 }
 0x492   : > { %3996 = vmatmul.mubr.bf16.vlgmr.msra.gmra.mxu0 %v2361_v51 }
 0x493   : > { %v2358_v53 = vpop.f32.mrf.mxu1  ;;  %4036 = vmatpush3.bf16.msra.mxu0 %v4364_v50  ;;  %4051 = vmatprep.mubr.msk.bf16.mxu0 %vm4487_vm0, %v4486_v48 }
 0x494   : > { %4037 = vmatprep.subr.bf16.mxu0 %v4486_v48 }
 0x495   : > { %v3978_v55 = vpop.f32.mrf.mxu1 }
 0x497   : > { %v2507_v56 = vpop.f32.mrf.mxu1  ;;  %4038 = vmatpush3.bf16.msra.mxu0 %v4365_v54 }
 0x498   : > { %v2513_v57 = vpack.c.bf16 %v2507_v56, %v2507_v56  ;;  %4039 = vmatprep.subr.bf16.mxu0 %v4486_v48 }
 0x499   : > { %v4005_v59 = vpop.f32.mrf.mxu1 }
 0x49a   : > { %4024 = vmatmul.mubr.bf16.vlgmr.msra.gmra.mxu1 %v2513_v57 }
 0x49b   : > { %4028 = vmatpush3.bf16.msra.mxu1 %v4818_v15  ;;  %v2510_v60 = vpop.f32.mrf.mxu1  ;;  %4031 = vmatprep.mubr.msk.bf16.mxu1 %vm4487_vm0, %v4486_v48 }
 0x49c   : > { %4029 = vmatprep.subr.bf16.mxu1 %v4486_v48  ;;  %4040 = vmatpush3.bf16.msra.mxu0 %v4366_v58  ;;  %v3690_v58 = vld [vmem:[%s642_s17] ss:$0 sm:$0xff]  ;;  %s4488_s17 = smov [#allocation2]  }
 0x49d   : > { %v4006_v62 = vpop.f32.mrf.mxu1  ;;  %4041 = vmatprep.subr.bf16.mxu0 %v4486_v48  ;;  %s4396_s16 = sshll.u32 %s4488_s17, 4  ;;  %s4397_s16 = int_to_ptr.vmem [resolvable:$false] %s4396_s16 }
 0x49e   : > { %s4398_s1 = scalar_lea.vmem %s4397_s16, 64 }
 0x49f   : > { %4030 = vmatpush3.bf16.msra.mxu1 %v4827_v17 }
 0x4a0   : > { %4055 = vmatprep.subr.bf16.mxu1 %v4486_v48  ;;  %4042 = vmatpush3.bf16.msra.mxu0 %v4368_v61 }
 0x4a1   : > { %4043 = vmatprep.subr.bf16.mxu0 %v4486_v48 }
 0x4a2   : > { %4032 = vmatmul.mubr.msk.bf16.vlgmr.msra.gmra.mxu1 %vm1708_vm3, %v3612_v63 }
 0x4a3   : > { %4056 = vmatpush3.bf16.msra.mxu1 %v4818_v15  ;;  %4059 = vmatprep.mubr.msk.bf16.mxu1 %vm4487_vm0, %v4486_v48 }
 0x4a4   : > { %4057 = vmatprep.subr.bf16.mxu1 %v4486_v48  ;;  %4044 = vmatpush3.bf16.msra.mxu0 %v4370_v2 }
 0x4a5   : > { %4045 = vmatprep.subr.bf16.mxu0 %v4486_v48 }
 0x4a7   : > { %4058 = vmatpush3.bf16.msra.mxu1 %v4827_v17 }
 0x4a8   : > { %4063 = vmatprep.subr.bf16.mxu1 %v4486_v48  ;;  %4046 = vmatpush3.bf16.msra.mxu0 %v4372_v4 }
 0x4a9   : > { %4047 = vmatprep.subr.bf16.mxu0 %v4486_v48 }
 0x4aa   : > { %4060 = vmatmul.mubr.msk.bf16.vlgmr.msra.gmra.mxu1 %vm1708_vm3, %v3638_v0 }
 0x4ab   : > { %4064 = vmatpush3.bf16.msra.mxu1 %v4367_v1  ;;  %4079 = vmatprep.mubr.msk.bf16.mxu1 %vm4487_vm0, %v4486_v48 }
 0x4ac   : > { %4065 = vmatprep.subr.bf16.mxu1 %v4486_v48  ;;  %4048 = vmatpush3.bf16.msra.mxu0 %v4374_v6 }
 0x4ad   : > { %4049 = vmatprep.subr.bf16.mxu0 %v4486_v48 }
 0x4af   : > { %4066 = vmatpush3.bf16.msra.mxu1 %v4369_v45 }
 0x4b0   : > { %4067 = vmatprep.subr.bf16.mxu1 %v4486_v48  ;;  %4050 = vmatpush3.bf16.msra.mxu0 %v4376_v8 }
 0x4b1   : > { %4083 = vmatprep.subr.bf16.mxu0 %v4486_v48 }
 0x4b3   : > { %4068 = vmatpush3.bf16.msra.mxu1 %v4371_v3 }
 0x4b4   : > { %4069 = vmatprep.subr.bf16.mxu1 %v4486_v48 }
 0x4b7   : > { %4070 = vmatpush3.bf16.msra.mxu1 %v4373_v5 }
 0x4b8   : > { %4071 = vmatprep.subr.bf16.mxu1 %v4486_v48 }
 0x4bb   : > { %4072 = vmatpush3.bf16.msra.mxu1 %v4375_v7 }
 0x4bc   : > { %4073 = vmatprep.subr.bf16.mxu1 %v4486_v48 }
 0x4bf   : > { %4074 = vmatpush3.bf16.msra.mxu1 %v4377_v9 }
 0x4c0   : > { %4075 = vmatprep.subr.bf16.mxu1 %v4486_v48 }
 0x4c3   : > { %4076 = vmatpush3.bf16.msra.mxu1 %v4378_v10 }
 0x4c4   : > { %4077 = vmatprep.subr.bf16.mxu1 %v4486_v48 }
 0x4c7   : > { %4078 = vmatpush3.bf16.msra.mxu1 %v4379_v11 }
 0x552   : > { %v2461_v12 = vpop.f32.mrf.mxu0 }
 0x553   : > { %v2467_v13 = vadd.f32 %v2461_v12, %v4978_v43 }
 0x554   : > { %v3997_v14 = vpop.f32.mrf.mxu0 }
 0x556   : > { %v2464_v16 = vpop.f32.mrf.mxu0 }
 0x558   : > { %v3998_v18 = vpop.f32.mrf.mxu0 }
 0x55a   : > { %v2613_v19 = vpop.f32.mrf.mxu1 }
 0x55b   : > { %v2619_v20 = vadd.f32 %v2613_v19, %v2467_v13 }
 0x55c   : > { %v4025_v21 = vpop.f32.mrf.mxu1 }
 0x55e   : > { %v2616_v22 = vpop.f32.mrf.mxu1 }
 0x560   : > { %v4026_v23 = vpop.f32.mrf.mxu1 }
 0x562   : > { %v2659_v24 = vpop.f32.mrf.mxu1 }
 0x563   : > { %v2665_v25 = vpack.c.bf16 %v2659_v24, %v2659_v24 }
 0x564   : > { %v4033_v26 = vpop.f32.mrf.mxu1 }
 0x565   : > { %4052 = vmatmul.mubr.bf16.vlgmr.msra.gmra.mxu0 %v2665_v25 }
 0x566   : > { %4084 = vmatpush3.bf16.msra.mxu0 %v4818_v15  ;;  %v2662_v27 = vpop.f32.mrf.mxu1  ;;  %4087 = vmatprep.mubr.msk.bf16.mxu0 %vm4487_vm0, %v4486_v48  ;;  %v4381_v15 = vld [vmem:[%s4741_s23 + $0x230] sm:$0xff]   ;;  %s3111_s23 = sshll.u32 %s4868_s15, 4  ;;  %s3112_s23 = int_to_ptr.vmem [resolvable:$true] %s3111_s23 }
 0x567   : > { %4085 = vmatprep.subr.bf16.mxu0 %v4486_v48  ;;  %s4392_s22 = scalar_lea.vmem %s3112_s23, 32  ;;  %p4399_p0 = scmp.lt.s32.totalorder %s3112_s23, %s4397_s16 }
 0x568   : > { %v4034_v28 = vpop.f32.mrf.mxu1  ;;  %p4393_p11 = scmp.ne.s32.totalorder %s3112_s23, %s4392_s22  ;;  %p4400_p1 = scmp.lt.s32.totalorder %s4398_s1, %s4392_s22 }
 0x56a   : > { %4086 = vmatpush3.bf16.msra.mxu0 %v4827_v17  ;;  %v2811_v29 = vpop.f32.mrf.mxu1  ;;  %p4394_p12 = pnand %p4393_p11, %p4598_p5  ;;  %p4401_p2 = por %p4400_p1, %p4399_p0 }
 0x56b   : > { %v2817_v32 = vpack.c.bf16 %v2811_v29, %v2811_v29  ;;  %4091 = vmatprep.subr.bf16.mxu0 %v4486_v48 }
 0x56c   : > { %v4061_v33 = vpop.f32.mrf.mxu1  ;;  %p4395_p13 = pneg %p4394_p12 }
 0x56d   : > { %4080 = vmatmul.mubr.bf16.vlgmr.msra.gmra.mxu1 %v2817_v32  ;;  %4088 = vmatmul.mubr.msk.bf16.vlgmr.msra.gmra.mxu0 %vm1708_vm3, %v3664_v30 }
 0x56e   : > { %4092 = vmatpush3.bf16.msra.mxu0 %v4380_v31  ;;  %v2814_v34 = vpop.f32.mrf.mxu1  ;;  %4107 = vmatprep.mubr.msk.bf16.mxu0 %vm4487_vm0, %v4486_v48  ;;  %p4402_p3 = pnand %p4401_p2, %p4395_p13 }
 0x56f   : > { %4093 = vmatprep.subr.bf16.mxu0 %v4486_v48 }
 0x570   : > { %v4062_v17 = vpop.f32.mrf.mxu1 }
 0x572   : > { %4094 = vmatpush3.bf16.msra.mxu0 %v4381_v15 }
 0x573   : > { %4095 = vmatprep.subr.bf16.mxu0 %v4486_v48 }
 0x576   : > { %4096 = vmatpush3.bf16.msra.mxu0 %v4382_v35 }
 0x577   : > { %4097 = vmatprep.subr.bf16.mxu0 %v4486_v48 }
 0x57a   : > { %4098 = vmatpush3.bf16.msra.mxu0 %v4383_v36 }
 0x57b   : > { %4099 = vmatprep.subr.bf16.mxu0 %v4486_v48 }
 0x57e   : > { %4100 = vmatpush3.bf16.msra.mxu0 %v4384_v37 }
 0x57f   : > { %4101 = vmatprep.subr.bf16.mxu0 %v4486_v48 }
 0x582   : > { %4102 = vmatpush3.bf16.msra.mxu0 %v4385_v38 }
 0x583   : > { %4103 = vmatprep.subr.bf16.mxu0 %v4486_v48 }
 0x586   : > { %4104 = vmatpush3.bf16.msra.mxu0 %v4386_v39 }
 0x587   : > { %4105 = vmatprep.subr.bf16.mxu0 %v4486_v48 }
 0x58a   : > { %4106 = vmatpush3.bf16.msra.mxu0 %v4387_v40 }
 0x625   : > { %v2765_v41 = vpop.f32.mrf.mxu0 }
 0x626   : > { %v2771_v42 = vadd.f32 %v2765_v41, %v2619_v20 }
 0x627   : > { %v4053_v43 = vpop.f32.mrf.mxu0 }
 0x629   : > { %v2768_v44 = vpop.f32.mrf.mxu0 }
 0x62b   : > { %v4054_v46 = vpop.f32.mrf.mxu0 }
 0x62d   : > { %v2917_v47 = vpop.f32.mrf.mxu1  ;;  %v2963_v49 = vpop.f32.mrf.mxu0 }
 0x62e   : > { %v2923_v50 = vadd.f32 %v2917_v47, %v2771_v42  ;;  %v2969_v51 = vpack.c.bf16 %v2963_v49, %v2963_v49 }
 0x62f   : > { %v4089_v52 = vpop.f32.mrf.mxu0  ;;  %v4081_v53 = vpop.f32.mrf.mxu1 }
 0x630   : > { %4108 = vmatmul.mubr.bf16.vlgmr.msra.gmra.mxu0 %v2969_v51 }
 0x631   : > { %v2966_v54 = vpop.f32.mrf.mxu0  ;;  %v2920_v55 = vpop.f32.mrf.mxu1 }
 0x633   : > { %v4090_v48 = vpop.f32.mrf.mxu0  ;;  %v4082_v56 = vpop.f32.mrf.mxu1 }
 0x6f0   : > { %v3069_v57 = vpop.f32.mrf.mxu0 }
 0x6f1   : > { %v3075_v59 = vadd.f32 %v3069_v57, %v2923_v50 }
 0x6f2   : > { %v4109_v60 = vpop.f32.mrf.mxu0 }
 0x6f3   : > { %v3083_v61 = vadd.f32 %v3690_v58, %v3075_v59 }
 0x6f4   : > { %v3072_v62 = vpop.f32.mrf.mxu0 }
 0x6f5   : > { %v3084_v63 = vmul.f32 %v3083_v61, %v3083_v61 }
 0x6f6   : > { %v4110_v0 = vpop.f32.mrf.mxu0 }
 0x6f7   : > { %v3085_v1 = vsel %vm1332_vm1, %v3084_v63, 0.0 }
 0x6f8   : > { %3086 = vadd.xlane.f32.xlu0 %v3085_v1 }
 0x6f9   : > { %4405 = shalt.err (!%p4402_p3)
}
 0x6fa   : > { %s4406_s3 = scalar_lea.hbm %s3109_s0, 32  ;;  %s4410_s21 = scalar_lea.hbm %s5131_s12, 64 }
 0x6fb   : > { %p4407_p4 = scmp.ne.s32.totalorder %s3109_s0, %s4406_s3  ;;  %p4411_p9 = scmp.lt.s32.totalorder %s3109_s0, %s5131_s12 }
 0x6fc   : > { %p4412_p10 = scmp.lt.s32.totalorder %s4410_s21, %s4406_s3 }
 0x6fd   : > { %p4408_p7 = pnand %p4407_p4, %p4598_p5 }
 0x6fe   : > { %p4413_p11 = por %p4412_p10, %p4411_p9 }
 0x6ff   : > { %p4409_p8 = pneg %p4408_p7 }
 0x701   : > { %p4414_p12 = pnand %p4413_p11, %p4409_p8 }
 0x703   : > { %4417 = shalt.err (!%p4414_p12)
}
 0x704   : > { %4114 = dma.vmem_to_hbm [thread:$0]  (%p4598_p5), %s3112_s23, 32, %s3109_s0, %s3093_s20  }
 0x705   : > { %s5148_s1 = sshll.u32 %s4862_s30, 1  ;;  %s5149_s4 = sshll.u32 %s4581_s29, 5 }
 0x706   : > { %s591_s16 = scalar_lea.vmem [#allocation4], %s5148_s1  ;;  %s3122_s17 = scalar_lea.hbm %s5132_s13, %s5149_s4 }
 0x707   : > { %s3124_s22 = sshll.u32 %s591_s16, 4  ;;  %s3098_s15 = scalar_lea.sflag [#allocation5], %s4862_s30  ;;  %s3125_s22 = int_to_ptr.vmem [resolvable:$true] %s3124_s22 }
 0x708   : > { %s4418_s2 = scalar_lea.vmem %s3125_s22, 32  ;;  %s4489_s0 = smov [#allocation4]  }
 0x709   : > { %p4419_p13 = scmp.ne.s32.totalorder %s3125_s22, %s4418_s2  ;;  %s4422_s23 = sshll.u32 %s4489_s0, 4  ;;  %s4423_s23 = int_to_ptr.vmem [resolvable:$false] %s4422_s23 }
 0x70a   : > { %s4424_s20 = scalar_lea.vmem %s4423_s23, 64  ;;  %p4425_p2 = scmp.lt.s32.totalorder %s3125_s22, %s4423_s23 }
 0x70b   : > { %p4420_p0 = pnand %p4419_p13, %p4598_p5  ;;  %p4426_p3 = scmp.lt.s32.totalorder %s4424_s20, %s4418_s2 }
 0x70d   : > { %p4421_p1 = pneg %p4420_p0  ;;  %p4427_p4 = por %p4426_p3, %p4425_p2 }
 0x70f   : > { %p4428_p7 = pnand %p4427_p4, %p4421_p1 }
 0x781   : > { %v3087_v45 = vpop.xlane.xlu0 %3086 }
 0x782   : > { %v3088_v2 = vmax.f32 %v3087_v45, 1e-24 }
 0x784   : > { %4390 = vrsqrt.f32 %v3088_v2 }
 0x791   : > { %v4391_v3 = vpop.eup %4390 }
 0x792   : > { %v3090_v4 = vmul.f32 %v4391_v3, %v3083_v61 }
 0x794   : > { %3091 = vst [vmem:[%s591_s16] sm:$0x3] %v3090_v4 }
 0x795   : > { %4431 = shalt.err (!%p4428_p7)
}
 0x796   : > { %s4432_s29 = scalar_lea.hbm %s3122_s17, 32  ;;  %s4436_s1 = scalar_lea.hbm %s5132_s13, 64 }
 0x797   : > { %p4433_p8 = scmp.ne.s32.totalorder %s3122_s17, %s4432_s29  ;;  %p4437_p11 = scmp.lt.s32.totalorder %s3122_s17, %s5132_s13 }
 0x798   : > { %p4438_p12 = scmp.lt.s32.totalorder %s4436_s1, %s4432_s29 }
 0x799   : > { %p4434_p9 = pnand %p4433_p8, %p4598_p5 }
 0x79a   : > { %p4439_p13 = por %p4438_p12, %p4437_p11 }
 0x79b   : > { %p4435_p10 = pneg %p4434_p9 }
 0x79d   : > { %p4440_p0 = pnand %p4439_p13, %p4435_p10 }
 0x79f   : > { %4443 = shalt.err (!%p4440_p0)
}
 0x7a0   : > { %4115 = dma.vmem_to_hbm [thread:$0]  (%p4598_p5), %s3125_s22, 32, %s3122_s17, %s3098_s15  }
 0x7a1 PF: > { %p4125_p1 = scmp.ge.s32.totalorder %s4482_s28, 2  ;;  %s3136_s3 = sand.u32 1, %s4470_s25  }
 0x7a2   : > { %s3137_s24 = scalar_lea.sflag [#allocation3], %s3136_s3 }
 0x7a3   : > { %p4119_p2 = pnand %p4125_p1, %p4602_p6 }
 0x7a5   : > { %p4120_p3 = pneg %p4119_p2 }
 0x7a7   : > { %4461 = dma.done.wait (%p4120_p3), %s3137_s24, 32  }
 0x7a8   : > { %4463 = vsyncadd (%p4120_p3), %s3137_s24, 4294967264  ;;  %s3146_s2 = scalar_lea.sflag [#allocation5], %s3136_s3 }
 0x7a9   : > { %4465 = dma.done.wait (%p4120_p3), %s3146_s2, 32  }
 0x7aa   : > { %4467 = vsyncadd (%p4120_p3), %s3146_s2, 4294967264  ;;  %s5150_s18 = sld [smem:[#allocation8_spill]]  ;;  %p27_p5 = scmp.ge.s32.totalorder %s4585_s14, 4  }
 0x7ab   : > { %s5151_s25 = smov %s4474_s26  ;;  %s5152_s26 = smov %s4478_s27 }
 0x7ac   : > { %s5154_s28 = smov %s4585_s14  ;;  %29 = sbr.rel (!%p27_p5) target bundleno = 11 (0xb), region = 169 }
 0x7b0   : > { %s5153_s27 = smov %s5150_s18 }
 0x7b1   :  { %3151 = vsyncpa [#allocation3], 1 }
 0x7b2   :  { %3153 = vsyncpa [#allocation3 + $0x1], 1 }
 0x7b3   :  { %3154 = vsyncpa [#allocation5], 1 }
 0x7b4   :  { %3156 = vsyncpa [#allocation5 + $0x1], 1 }

</bundles_post_ra>
